<compile_context>
chip_gen: v6e
topology: v6e:2x2x1
jax: 0.10.0
libtpu: 0.0.40
codegen_flags: <defaults>
</compile_context>

<pallas_src>
import functools

import jax
import jax.numpy as jnp
from jax import lax
from jax.experimental import pallas as pl
from jax.experimental.pallas import tpu as pltpu


# ----------------------------------------------------------------------------
# small helpers
# ----------------------------------------------------------------------------
def _round_up(n, m):
    return ((n + m - 1) // m) * m


def _vmem_limit(block_bytes):
    # 2x for BlockSpec double-buffering + headroom; capped below v7x's 64 MiB
    # physical VMEM so the same tiles compile on v5e/v6e/v7x.
    return int(min(max(2 * int(block_bytes) + (8 << 20), 24 << 20), 48 << 20))


def _row_tile(m, cap=4096):
    """Largest row tile that is a multiple of 8, divides m, and leaves >=2 grid
    steps (second TensorCore on v7x).  Ragged fallback relies on Pallas masking
    out-of-bounds stores (row-wise kernels only)."""
    if m <= 8:
        return m
    limit = min(cap, max(m // 2, 8))
    limit -= limit % 8
    if limit < 8:
        return m
    for t in range(limit, 7, -8):
        if m % t == 0:
            return t
    return limit


def _pick_bp(b, cap=8):
    """Graphs per grid step for the attention kernel (bp only appears in leading
    block dims / bp*N row counts, N is padded to a multiple of 8).  Keeps >=2
    grid steps when B >= 2 so v7x's second TC has work."""
    target = max(b // 2, 1)
    for bp in (8, 4, 2, 1):
        if bp <= min(target, cap) and b % bp == 0:
            return bp
    return 1


def _pick_bp_rows(b):
    """Graphs per grid step when the graph index is the block's second-minor dim
    (k-cycle output): must be a multiple of 8 or the full batch."""
    if b >= 16 and b % 8 == 0:
        return 8
    return b


def _bcast_spec(shape):
    n = len(shape)
    return pl.BlockSpec(shape, lambda i, _n=n: (0,) * _n)


# ----------------------------------------------------------------------------
# Pallas kernel 1: fused 2-layer MLP   o = (relu)(relu(x@W1+b1)@W2+b2)
# ----------------------------------------------------------------------------
def _mlp2_kernel(x_ref, w1_ref, b1_ref, w2_ref, b2_ref, o_ref, *, relu_last):
    h = jnp.dot(x_ref[...], w1_ref[...],
                preferred_element_type=jnp.float32) + b1_ref[...]
    h = jnp.maximum(h, 0.0)
    o = jnp.dot(h.astype(jnp.bfloat16), w2_ref[...],
                preferred_element_type=jnp.float32) + b2_ref[...]
    if relu_last:
        o = jnp.maximum(o, 0.0)
    o_ref[...] = o.astype(o_ref.dtype)


def mlp2(p1, p2, x, relu_last, out_dtype=jnp.float32):
    x = x.astype(jnp.bfloat16)
    m, din = x.shape
    dh = p1['w'].shape[1]
    dout = p2['w'].shape[1]
    tm = _row_tile(m)
    grid = (pl.cdiv(m, tm),)
    block_bytes = tm * (2 * din + 4 * dh + 4 * dout) + 2 * (din * dh + dh * dout)
    return pl.pallas_call(
        functools.partial(_mlp2_kernel, relu_last=relu_last),
        grid=grid,
        in_specs=[pl.BlockSpec((tm, din), lambda i: (i, 0)),
                  _bcast_spec((din, dh)), _bcast_spec((1, dh)),
                  _bcast_spec((dh, dout)), _bcast_spec((1, dout))],
        out_specs=pl.BlockSpec((tm, dout), lambda i: (i, 0)),
        out_shape=jax.ShapeDtypeStruct((m, dout), out_dtype),
        compiler_params=pltpu.CompilerParams(
            dimension_semantics=("parallel",),
            vmem_limit_bytes=_vmem_limit(block_bytes)),
    )(x,
      p1['w'].astype(jnp.bfloat16), p1['b'].reshape(1, dh).astype(jnp.float32),
      p2['w'].astype(jnp.bfloat16), p2['b'].reshape(1, dout).astype(jnp.float32))


def mlp2_xla(p1, p2, x, relu_last):
    # tiny per-batch y-path MLPs: kernel launch would be pure overhead.
    h = jnp.maximum(x @ p1['w'] + p1['b'], 0.0)
    o = h @ p2['w'] + p2['b']
    return jnp.maximum(o, 0.0) if relu_last else o


# ----------------------------------------------------------------------------
# Pallas kernel 2: fused edge FFN + residual + mask
# ----------------------------------------------------------------------------
def _edge_ffn_kernel(e_ref, m_ref, w1_ref, b1_ref, w2_ref, b2_ref, o_ref):
    e_bf = e_ref[...]                                              # (TM, de) bf16
    h = jnp.dot(e_bf, w1_ref[...],
                preferred_element_type=jnp.float32) + b1_ref[...]
    h = jnp.maximum(h, 0.0)
    out = e_bf.astype(jnp.float32) + jnp.dot(
        h.astype(jnp.bfloat16), w2_ref[...],
        preferred_element_type=jnp.float32) + b2_ref[...]
    o_ref[...] = (out * m_ref[...]).astype(o_ref.dtype)


def edge_ffn(E, e_mask, lp):
    B, N, _, de = E.shape
    m = B * N * N
    dff = lp['e1']['w'].shape[1]
    Ef = E.reshape(m, de).astype(jnp.bfloat16)
    mf = e_mask.reshape(m, 1).astype(jnp.float32)
    tm = _row_tile(m)
    grid = (pl.cdiv(m, tm),)
    block_bytes = tm * (2 * de + 4 * dff + 2 * de + 4) + 2 * (2 * de * dff)
    out = pl.pallas_call(
        _edge_ffn_kernel,
        grid=grid,
        in_specs=[pl.BlockSpec((tm, de), lambda i: (i, 0)),
                  pl.BlockSpec((tm, 1), lambda i: (i, 0)),
                  _bcast_spec((de, dff)), _bcast_spec((1, dff)),
                  _bcast_spec((dff, de)), _bcast_spec((1, de))],
        out_specs=pl.BlockSpec((tm, de), lambda i: (i, 0)),
        out_shape=jax.ShapeDtypeStruct((m, de), jnp.bfloat16),
        compiler_params=pltpu.CompilerParams(
            dimension_semantics=("parallel",),
            vmem_limit_bytes=_vmem_limit(block_bytes)),
    )(Ef, mf,
      lp['e1']['w'].astype(jnp.bfloat16), lp['e1']['b'].reshape(1, dff).astype(jnp.float32),
      lp['e2']['w'].astype(jnp.bfloat16), lp['e2']['b'].reshape(1, de).astype(jnp.float32))
    return out.reshape(B, N, N, de)


# ----------------------------------------------------------------------------
# Pallas kernel 3: k-cycle features
#   A^2/A^3 matmuls only; diag identities (need only symmetric A); one
#   lane-dense (bp, 8*N)=(bp,128) output slab.
# ----------------------------------------------------------------------------
def _cycle_kernel(adj_ref, out_ref):
    bp, N, _ = adj_ref.shape
    ones_row = jnp.ones((1, N), jnp.float32)
    zeros_row = jnp.zeros((1, N), jnp.float32)
    rows = []
    # NOTE: per-graph loop kept (bp <= 8); batched dot_general lowering inside
    # Mosaic is avoided for robustness -- each matmul is a tiny 16^3 MXU pass.
    for g in range(bp):
        A = adj_ref[g]                                              # (N, N) symmetric
        A2 = jnp.dot(A, A, preferred_element_type=jnp.float32)
        A3 = jnp.dot(A2, A, preferred_element_type=jnp.float32)
        d_row = jnp.sum(A, axis=0, keepdims=True)                   # (1, N)
        d_col = jnp.sum(A, axis=1, keepdims=True)                   # (N, 1)
        dA2 = jnp.sum(A * A, axis=0, keepdims=True)
        dA3 = jnp.sum(A * A2, axis=0, keepdims=True)
        dA4 = jnp.sum(A2 * A2, axis=0, keepdims=True)
        dA5 = jnp.sum(A2 * A3, axis=0, keepdims=True)
        dA6 = jnp.sum(A3 * A3, axis=0, keepdims=True)
        Ad = jnp.sum(A * d_col, axis=0, keepdims=True)              # (A @ d) as a row
        tri_col = jnp.sum(A * A2, axis=1, keepdims=True)
        Atri = jnp.sum(A * tri_col, axis=0, keepdims=True)          # (A @ tri) as a row

        c3 = dA3 / 2.0
        y3 = jnp.sum(dA3) / 6.0
        c4 = dA4 - d_row * (d_row - 1.0) - Ad
        y4 = jnp.sum(c4) / 8.0
        c4 = c4 / 2.0
        c5 = dA5 - 2.0 * dA3 * d_row - Atri + dA3
        y5 = jnp.sum(c5) / 10.0
        c5 = c5 / 2.0
        t1 = jnp.sum(dA6)
        t2 = jnp.sum(dA3 * dA3)
        t3 = jnp.sum(A * A2 * A2)
        t4 = jnp.sum(dA2 * dA4)
        t5 = jnp.sum(dA4)
        t6 = jnp.sum(dA3)
        t7 = jnp.sum(dA2 ** 3)
        t8 = jnp.sum(A3)
        t9 = jnp.sum(dA2 ** 2)
        t10 = jnp.sum(dA2)
        c6 = (t1 - 3.0 * t2 + 9.0 * t3 - 6.0 * t4 + 6.0 * t5 - 4.0 * t6
              + 4.0 * t7 + 3.0 * t8 - 12.0 * t9 + 5.0 * t10) / 12.0

        # lane-dense row: [c3 | c4 | c5 | y3 | y4 | y5 | c6 | 0] x N lanes each
        rows.append(jnp.concatenate(
            [c3, c4, c5, y3 * ones_row, y4 * ones_row, y5 * ones_row,
             c6 * ones_row, zeros_row], axis=-1))
    out_ref[...] = jnp.concatenate(rows, axis=0) if bp > 1 else rows[0]


def kcycle_features(adj):
    B, N0, _ = adj.shape
    Np = max(_round_up(N0, 8), 8)
    if Np != N0:
        p = Np - N0
        adj = jnp.pad(adj, ((0, 0), (0, p), (0, p)))
    bp = _pick_bp_rows(B)
    block_bytes = 4 * bp * Np * (6 * Np + 8)
    out = pl.pallas_call(
        _cycle_kernel,
        grid=(B // bp,),
        in_specs=[pl.BlockSpec((bp, Np, Np), lambda b: (b, 0, 0))],
        out_specs=pl.BlockSpec((bp, 8 * Np), lambda b: (b, 0)),
        out_shape=jax.ShapeDtypeStruct((B, 8 * Np), jnp.float32),
        compiler_params=pltpu.CompilerParams(
            dimension_semantics=("parallel",),
            vmem_limit_bytes=_vmem_limit(block_bytes)),
    )(adj.astype(jnp.float32))
    feats = out.reshape(B, 8, Np)
    x_cyc = jnp.stack([feats[:, 0, :N0], feats[:, 1, :N0], feats[:, 2, :N0]],
                      axis=-1)                                      # (B, N0, 3)
    y_cyc = feats[:, 3:7, 0]                                        # (B, 4)
    return x_cyc, y_cyc


# ----------------------------------------------------------------------------
# Pallas kernel 4: fused node attention
#   QKV fused matmul, precomputed per-head edge bias (+key mask) added to the
#   logits, per-head softmax, fused output projection + y-FiLM + node FFN.
#   Bp graphs per grid step on a flattened (bp*N, dx) row layout.
# ----------------------------------------------------------------------------
def _node_attention_kernel(x_ref, eb_ref, ym_ref,
                           wqkv_ref, wo_ref, bo_ref,
                           wf1_ref, bf1_ref, wf2_ref, bf2_ref, o_ref):
    bp, n_head, N, _ = eb_ref.shape
    dx = o_ref.shape[-1]
    dh = dx // n_head
    scale = 1.0 / (float(dh) ** 0.5)

    x_bf = x_ref[...]                                               # (bp*N, dx) bf16
    Xf = x_bf.astype(jnp.float32)
    qkv = jnp.dot(x_bf, wqkv_ref[...],
                  preferred_element_type=jnp.float32)               # (bp*N, 3*dx)

    ctxs = []
    for g in range(bp):
        r0 = g * N
        q_g = qkv[r0:r0 + N, 0:dx].astype(jnp.bfloat16)
        k_g = qkv[r0:r0 + N, dx:2 * dx].astype(jnp.bfloat16)
        v_g = qkv[r0:r0 + N, 2 * dx:3 * dx].astype(jnp.bfloat16)
        heads = []
        for h in range(n_head):
            qh = q_g[:, h * dh:(h + 1) * dh]
            kh = k_g[:, h * dh:(h + 1) * dh]
            vh = v_g[:, h * dh:(h + 1) * dh]
            logits = lax.dot_general(qh, kh, (((1,), (1,)), ((), ())),
                                     preferred_element_type=jnp.float32)
            logits = logits * scale + eb_ref[g, h]                  # bias + key mask
            mx = jnp.max(logits, axis=-1, keepdims=True)
            p = jnp.exp(logits - mx)
            attn = p * pl.reciprocal(jnp.sum(p, axis=-1, keepdims=True), approx=True)
            heads.append(jnp.dot(attn.astype(jnp.bfloat16), vh,
                                 preferred_element_type=jnp.float32))
        ctxs.append(jnp.concatenate(heads, axis=-1))                # (N, dx)
    ctx = jnp.concatenate(ctxs, axis=0) if bp > 1 else ctxs[0]      # (bp*N, dx)

    Xn = Xf + jnp.dot(ctx.astype(jnp.bfloat16), wo_ref[...],
                      preferred_element_type=jnp.float32) + bo_ref[...] + ym_ref[...]
    h1 = jnp.maximum(jnp.dot(Xn.astype(jnp.bfloat16), wf1_ref[...],
                             preferred_element_type=jnp.float32) + bf1_ref[...], 0.0)
    Xn = Xn + jnp.dot(h1.astype(jnp.bfloat16), wf2_ref[...],
                      preferred_element_type=jnp.float32) + bf2_ref[...]
    o_ref[...] = Xn.astype(o_ref.dtype)


def node_attention(X, ebias, ym_rows, lp, n_head):
    B, N, dx = X.shape
    dff = lp['f1']['w'].shape[1]
    bp = _pick_bp(B)
    grid = (B // bp,)

    Xf = X.reshape(B * N, dx).astype(jnp.bfloat16)
    block_bytes = (2 * bp * N * dx + 4 * bp * n_head * N * N + 4 * bp * N * dx
                   + 2 * bp * N * dx
                   + 2 * (3 * dx * dx + dx * dx + dx * dff + dff * dx)
                   + 4 * (2 * dx + dff))

    out = pl.pallas_call(
        _node_attention_kernel,
        grid=grid,
        in_specs=[
            pl.BlockSpec((bp * N, dx), lambda b: (b, 0)),
            pl.BlockSpec((bp, n_head, N, N), lambda b: (b, 0, 0, 0)),
            pl.BlockSpec((bp * N, dx), lambda b: (b, 0)),
            _bcast_spec((dx, 3 * dx)), _bcast_spec((dx, dx)), _bcast_spec((1, dx)),
            _bcast_spec((dx, dff)), _bcast_spec((1, dff)),
            _bcast_spec((dff, dx)), _bcast_spec((1, dx)),
        ],
        out_specs=pl.BlockSpec((bp * N, dx), lambda b: (b, 0)),
        out_shape=jax.ShapeDtypeStruct((B * N, dx), jnp.bfloat16),
        compiler_params=pltpu.CompilerParams(
            dimension_semantics=("parallel",),
            vmem_limit_bytes=_vmem_limit(block_bytes)),
    )(Xf, ebias.astype(jnp.float32), ym_rows.astype(jnp.float32),
      lp['wqkv'].astype(jnp.bfloat16), lp['wo'].astype(jnp.bfloat16),
      lp['bo'].reshape(1, dx).astype(jnp.float32),
      lp['f1']['w'].astype(jnp.bfloat16), lp['f1']['b'].reshape(1, dff).astype(jnp.float32),
      lp['f2']['w'].astype(jnp.bfloat16), lp['f2']['b'].reshape(1, dx).astype(jnp.float32))
    return out.reshape(B, N, dx)


# ----------------------------------------------------------------------------
# Graph-transformer building blocks (DiGress-style)
# TODO(synk): source of GraphTransformer / MolecularEncoder was not provided with the
# module; they are modelled here as DiGress-style X/E/y transformer blocks.
# ----------------------------------------------------------------------------
def transformer_layer(lp, X, E, y, node_mask, n_head):
    B, N, dx = X.shape
    x_mask = node_mask[..., None]                                    # (B, N, 1)
    e_mask = x_mask[:, :, None, :] * x_mask[:, None, :, :]           # (B, N, N, 1)

    # Per-head edge attention bias + key-padding mask: tiny XLA contraction
    # (replaces the old in-kernel de x n_head scalar accumulation loop and the
    # channel-first E transpose).
    ebias = jnp.einsum('bijc,ch->bhij', E.astype(jnp.float32),
                       lp['we'].astype(jnp.float32))
    ebias = ebias + (node_mask[:, None, None, :] - 1.0) * 1e9        # (B, H, N, N)

    # y-FiLM rows precomputed in XLA (tiny) and broadcast to node rows.
    ymod = y @ lp['wyx']                                             # (B, dx)
    ym_rows = jnp.repeat(ymod, N, axis=0)                            # (B*N, dx)

    Xn = node_attention(X, ebias, ym_rows, lp, n_head)
    Xn = (Xn * x_mask).astype(jnp.bfloat16)

    # edge update: fused residual FFN + mask
    En = edge_ffn(E, e_mask, lp)
    # TODO(synk): the reference NodeEdgeBlock also feeds attention products and y-FiLM
    # back into E; omitted because that source is unavailable.

    # global (y) update from pooled nodes / edges (tiny — plain XLA)
    n_nodes = jnp.maximum(jnp.sum(node_mask, axis=1, keepdims=True), 1.0)
    x_pool = jnp.sum(Xn.astype(jnp.float32) * x_mask, axis=1) / n_nodes
    e_pool = jnp.sum(En.astype(jnp.float32) * e_mask, axis=(1, 2)) / (n_nodes * n_nodes)
    yn = (y
          + x_pool @ lp['xy']['w'] + lp['xy']['b']
          + e_pool @ lp['ey']['w'] + lp['ey']['b']
          + y @ lp['yy']['w'] + lp['yy']['b'])
    return Xn, En, yn


def graph_net_forward(params, X, E, y, node_mask, out_dims, n_head):
    B, N0, _ = X.shape
    N = max(_round_up(N0, 8), 8)                 # pad nodes to a sublane multiple
    if N != N0:
        p = N - N0
        X = jnp.pad(X, ((0, 0), (0, p), (0, 0)))
        E = jnp.pad(E, ((0, 0), (0, p), (0, p), (0, 0)))
        node_mask = jnp.pad(node_mask, ((0, 0), (0, p)))

    x_mask = node_mask[..., None]
    e_mask1 = x_mask[:, :, None, :]
    e_mask2 = x_mask[:, None, :, :]
    diag_mask = (1.0 - jnp.eye(N))[None, :, :, None]

    X_to_out = X[..., :out_dims['X']]
    E_to_out = E[..., :out_dims['E']]
    y_to_out = y[..., :out_dims['y']]

    Xh = mlp2(params['in_X1'], params['in_X2'], X.reshape(B * N, -1),
              relu_last=True, out_dtype=jnp.bfloat16).reshape(B, N, -1)
    Eh = mlp2(params['in_E1'], params['in_E2'], E.reshape(B * N * N, -1),
              relu_last=True, out_dtype=jnp.bfloat16).reshape(B, N, N, -1)
    Eh = 0.5 * (Eh + jnp.swapaxes(Eh, 1, 2))
    yh = mlp2_xla(params['in_y1'], params['in_y2'], y, relu_last=True)
    Xh = (Xh * x_mask).astype(jnp.bfloat16)
    Eh = (Eh * e_mask1 * e_mask2).astype(jnp.bfloat16)

    for lp in params['layers']:
        Xh, Eh, yh = transformer_layer(lp, Xh, Eh, yh, node_mask, n_head)

    Xo = mlp2(params['out_X1'], params['out_X2'], Xh.reshape(B * N, -1),
              relu_last=False).reshape(B, N, -1)
    Eo = mlp2(params['out_E1'], params['out_E2'], Eh.reshape(B * N * N, -1),
              relu_last=False).reshape(B, N, N, -1)
    yo = mlp2_xla(params['out_y1'], params['out_y2'], yh, relu_last=False)

    Xo = Xo + X_to_out
    Eo = (Eo + E_to_out) * diag_mask
    yo = yo + y_to_out
    Eo = 0.5 * (Eo + jnp.swapaxes(Eo, 1, 2))
    Xo = Xo * x_mask
    Eo = Eo * e_mask1 * e_mask2
    if N != N0:
        Xo = Xo[:, :N0]
        Eo = Eo[:, :N0, :N0]
    return Xo, Eo, yo


# ----------------------------------------------------------------------------
# Extra features (cycles via Pallas, eigen/molecular features in JAX glue)
# ----------------------------------------------------------------------------
def eigen_features(E_t, node_mask, k_eval=5, k_evec=2):
    B, N = node_mask.shape
    mask = node_mask
    A = jnp.sum(E_t[..., 1:], axis=-1) * mask[:, :, None] * mask[:, None, :]
    deg = jnp.sum(A, axis=-1)
    eye = jnp.eye(N)
    L = deg[:, :, None] * eye[None] - A
    not_mask = 1.0 - mask
    mask_diag = (2.0 * N) * eye[None] * not_mask[:, :, None] * not_mask[:, None, :]
    L = L * mask[:, :, None] * mask[:, None, :] + mask_diag
    # TODO(synk): eigendecomposition has no Pallas equivalent; computed with jnp.linalg.eigh.
    eigvals, eigvecs = jnp.linalg.eigh(L)
    n_real = jnp.maximum(jnp.sum(mask, axis=1, keepdims=True), 1.0)
    eigvals = eigvals / n_real
    eigvecs = eigvecs * mask[:, :, None] * mask[:, None, :]

    n_connected = jnp.sum((eigvals < 1e-5).astype(jnp.int32), axis=-1)        # (B,)
    ev_ext = jnp.concatenate([eigvals, 2.0 * jnp.ones((B, k_eval))], axis=1)
    idx = jnp.arange(k_eval)[None, :] + n_connected[:, None]
    first_k_ev = jnp.take_along_axis(ev_ext, idx, axis=1)                      # (B, k_eval)

    # TODO(synk): DiGress identifies the non-LCC nodes with torch.mode + random noise on
    # padded entries; reproduced deterministically with distinct sentinels instead.
    first_ev = jnp.round(eigvecs[:, :, 0], 3) * mask
    sentinel = 1000.0 + jnp.arange(N, dtype=jnp.float32)[None, :]
    fe = jnp.where(mask > 0, first_ev, sentinel)
    counts = jnp.sum((fe[:, :, None] == fe[:, None, :]).astype(jnp.int32), axis=-1)
    mode_val = jnp.take_along_axis(fe, jnp.argmax(counts, axis=-1)[:, None], axis=1)
    not_lcc = ((fe != mode_val).astype(jnp.float32) * mask)[:, :, None]        # (B, N, 1)

    vec_ext = jnp.concatenate([eigvecs, jnp.zeros((B, N, k_evec))], axis=2)
    vidx = jnp.arange(k_evec)[None, None, :] + n_connected[:, None, None]
    vidx = jnp.broadcast_to(vidx, (B, N, k_evec))
    k_lowest_evec = jnp.take_along_axis(vec_ext, vidx, axis=2) * mask[:, :, None]
    return n_connected.astype(jnp.float32)[:, None], first_k_ev, not_lcc, k_lowest_evec


def molecular_features(X_t, E_t, valencies, atom_weights, max_weight):
    bond_orders = jnp.array([0.0, 1.0, 2.0, 3.0, 1.5]).reshape(1, 1, 1, -1)
    weighted_E = E_t * bond_orders
    current_val = jnp.sum(jnp.argmax(weighted_E, axis=-1), axis=-1).astype(jnp.float32)
    val_arr = jnp.array(valencies, jnp.float32).reshape(1, 1, -1)
    normal_val = jnp.argmax(X_t * val_arr, axis=-1).astype(jnp.float32)
    charge = (normal_val - current_val)[..., None]
    valency = current_val[..., None]
    atom_w = jnp.array([atom_weights[i] for i in range(len(atom_weights))], jnp.float32)
    weight = jnp.sum(jnp.take(atom_w, jnp.argmax(X_t, axis=-1)), axis=-1,
                     keepdims=True) / max_weight
    return charge, valency, weight


def compute_extra_data(data, cfg):
    X_t, E_t, node_mask = data['X_t'], data['E_t'], data['node_mask']
    adj = jnp.sum(E_t[..., 1:], axis=-1)        # symmetric adjacency (required by kernel)

    x_cyc, y_cyc = kcycle_features(adj)                     # Pallas kernel
    x_cyc = jnp.minimum((x_cyc * node_mask[..., None]) / 10.0, 1.0)
    y_cyc = jnp.minimum(y_cyc / 10.0, 1.0)

    n = jnp.sum(node_mask, axis=1, keepdims=True) / cfg['max_n_nodes']
    n_conn, eigvals_k, not_lcc, evec_k = eigen_features(E_t, node_mask)
    charge, valency, weight = molecular_features(
        X_t, E_t, cfg['valencies'], cfg['atom_weights'], cfg['max_weight'])

    extra_X = jnp.concatenate([x_cyc, not_lcc, evec_k, charge, valency], axis=-1)   # (B,N,8)
    extra_E = jnp.zeros(E_t.shape[:-1] + (0,), jnp.float32)
    extra_y = jnp.concatenate([n, y_cyc, n_conn, eigvals_k, weight], axis=-1)       # (B,12)
    return extra_X, extra_E, extra_y


# ----------------------------------------------------------------------------
# molecularGT forward
# ----------------------------------------------------------------------------
def molecular_gt_forward(params, cfg, X, E, y, node_mask, X_condition, E_condition):
    B = X.shape[0]
    y_condition = jnp.zeros((B, 0), jnp.float32)

    # preprocess_molecular_data: PlaceHolder(...).mask(node_mask)
    x_mask = node_mask[..., None]
    Xc = X_condition * x_mask
    Ec = E_condition * x_mask[:, :, None, :] * x_mask[:, None, :, :]
    data = {'X_t': Xc, 'E_t': Ec, 'y_t': y_condition, 'node_mask': node_mask}

    extra_X, extra_E, extra_y = compute_extra_data(data, cfg)
    Xc_in = jnp.concatenate([data['X_t'], extra_X], axis=2).astype(jnp.float32)
    Ec_in = jnp.concatenate([data['E_t'], extra_E], axis=3).astype(jnp.float32)
    yc_in = jnp.concatenate([data['y_t'], extra_y], axis=1).astype(jnp.float32)
    # NOTE: reference dumps X/E/y_condition to .npy files here; file I/O intentionally omitted.

    _, _, condition_vec = graph_net_forward(
        params['conditionEn'], Xc_in, Ec_in, yc_in, node_mask,
        cfg['output_dims'], cfg['n_head'])

    y_full = jnp.concatenate([y, condition_vec], axis=1).astype(jnp.float32)
    return graph_net_forward(params['GT'], X, E, y_full, node_mask,
                             cfg['output_dims'], cfg['n_head'])


# ----------------------------------------------------------------------------
# Deterministic parameter init
# ----------------------------------------------------------------------------
def init_graph_net_params(key, in_dims, hidden_mlp, hidden, out_dims, n_layers):
    dx, de, dy, n_head = hidden['dx'], hidden['de'], hidden['dy'], hidden['n_head']
    keys = iter(jax.random.split(key, 16 + 16 * n_layers))

    def lin(din, dout):
        w = jax.random.normal(next(keys), (din, dout), jnp.float32) / jnp.sqrt(float(din))
        return {'w': w, 'b': jnp.zeros((dout,), jnp.float32)}

    p = {
        'in_X1': lin(in_dims['X'], hidden_mlp['X']), 'in_X2': lin(hidden_mlp['X'], dx),
        'in_E1': lin(in_dims['E'], hidden_mlp['E']), 'in_E2': lin(hidden_mlp['E'], de),
        'in_y1': lin(in_dims['y'], hidden_mlp['y']), 'in_y2': lin(hidden_mlp['y'], dy),
        'out_X1': lin(dx, hidden_mlp['X']), 'out_X2': lin(hidden_mlp['X'], out_dims['X']),
        'out_E1': lin(de, hidden_mlp['E']), 'out_E2': lin(hidden_mlp['E'], out_dims['E']),
        'out_y1': lin(dy, hidden_mlp['y']), 'out_y2': lin(hidden_mlp['y'], out_dims['y']),
        'layers': [],
    }
    for _ in range(n_layers):
        layer = {
            # fused QKV (columns grouped per head inside each third) and fused output proj
            'wqkv': jax.random.normal(next(keys), (dx, 3 * dx), jnp.float32) / jnp.sqrt(float(dx)),
            'wo': jax.random.normal(next(keys), (dx, dx), jnp.float32) / jnp.sqrt(float(dx)),
            'bo': jnp.zeros((dx,), jnp.float32),
            'we': jax.random.normal(next(keys), (de, n_head), jnp.float32) / jnp.sqrt(float(de)),
            'wyx': jax.random.normal(next(keys), (dy, dx), jnp.float32) / jnp.sqrt(float(dy)),
            'f1': lin(dx, 2 * dx), 'f2': lin(2 * dx, dx),
            'e1': lin(de, 2 * de), 'e2': lin(2 * de, de),
            'xy': lin(dx, dy), 'ey': lin(de, dy), 'yy': lin(dy, dy),
        }
        p['layers'].append(layer)
    return p


# ----------------------------------------------------------------------------
if __name__ == "__main__":
    # dataset-info constants from molecularGT.__init__
    valencies = [4, 3, 2, 1, 3, 2, 1, 1, 1]
    atom_weights = {0: 12, 1: 14, 2: 16, 3: 19, 4: 30.97, 5: 32.07, 6: 35.45, 7: 79.9, 8: 126.9}
    max_n_nodes, max_weight = 15, 564

    B, N = 2, max_n_nodes
    dX, dE, dy_raw = 9, 5, 1                       # atom types / bond types / raw global dim
    n_layers_GT = 2
    hidden_mlp_dims = {'X': 32, 'E': 16, 'y': 16}
    hidden_dims = {'dx': 32, 'de': 16, 'dy': 16, 'n_head': 4}
    output_dims = {'X': 9, 'E': 5, 'y': 8}

    cond_in_dims = {'X': dX + 8, 'E': dE + 0, 'y': 12}          # con_input_dim['y'] = 12
    gt_in_dims = {'X': dX, 'E': dE, 'y': dy_raw + output_dims['y']}

    key = jax.random.PRNGKey(0)
    k_param, k_data = jax.random.split(key)
    k_cond, k_gt = jax.random.split(k_param)
    params = {
        'conditionEn': init_graph_net_params(k_cond, cond_in_dims, hidden_mlp_dims,
                                             hidden_dims, output_dims, n_layers_GT),
        'GT': init_graph_net_params(k_gt, gt_in_dims, hidden_mlp_dims,
                                    hidden_dims, output_dims, n_layers_GT),
    }
    cfg = {'output_dims': output_dims, 'n_head': hidden_dims['n_head'],
           'max_n_nodes': max_n_nodes, 'valencies': valencies,
           'atom_weights': atom_weights, 'max_weight': max_weight}

    kd = jax.random.split(k_data, 6)
    n_valid = jnp.array([12, 9])
    node_mask = (jnp.arange(N)[None, :] < n_valid[:, None]).astype(jnp.float32)

    def one_hot_graph(kx, ke):
        x_idx = jax.random.randint(kx, (B, N), 0, dX)
        Xg = jax.nn.one_hot(x_idx, dX, dtype=jnp.float32)
        e_idx = jax.random.randint(ke, (B, N, N), 0, dE)
        e_idx = jnp.triu(e_idx, 1)
        e_idx = e_idx + jnp.swapaxes(e_idx, 1, 2)               # symmetric, zero diagonal
        Eg = jax.nn.one_hot(e_idx, dE, dtype=jnp.float32)
        return Xg, Eg

    X, E = one_hot_graph(kd[0], kd[1])
    X_condition, E_condition = one_hot_graph(kd[2], kd[3])
    y = jax.random.normal(kd[4], (B, dy_raw), jnp.float32)

    out_X, out_E, out_y = molecular_gt_forward(
        params, cfg, X, E, y, node_mask, X_condition, E_condition)
    jax.block_until_ready((out_X, out_E, out_y))
    assert out_X.shape == (B, N, output_dims['X'])
    assert out_E.shape == (B, N, N, output_dims['E'])
    assert out_y.shape == (B, output_dims['y'])
    print("KERNEL_OK")
</pallas_src>

<mosaic_0001>
module attributes {stable_mosaic.version = 11 : i64} {
  func.func @_cycle_kernel(%arg0: i32, %arg1: memref<2x16x16xf32, #tpu.memory_space<vmem>>, %arg2: memref<2x128xf32, #tpu.memory_space<vmem>>) attributes {dimension_semantics = [#tpu.dimension_semantics<parallel>], iteration_bounds = array<i64: 1>, scalar_prefetch = 0 : i64, scratch_operands = 0 : i64, tpu.core_type = #tpu.core_type<tc>, window_params = [{transform_indices = @transform_0, window_bounds = array<i64: 2, 16, 16>}, {transform_indices = @transform_1, window_bounds = array<i64: 2, 128>}]} {
    %cst = arith.constant 1.000000e+00 : f32
    %0 = vector.broadcast %cst : f32 to vector<1x16xf32>
    %cst_0 = arith.constant 0.000000e+00 : f32
    %1 = vector.broadcast %cst_0 : f32 to vector<1x16xf32>
    %c0 = arith.constant 0 : index
    %c0_1 = arith.constant 0 : index
    %c0_2 = arith.constant 0 : index
    %2 = vector.load %arg1[%c0, %c0_1, %c0_2] : memref<2x16x16xf32, #tpu.memory_space<vmem>>, vector<1x16x16xf32>
    %3 = vector.shape_cast %2 : vector<1x16x16xf32> to vector<16x16xf32>
    %cst_3 = arith.constant dense<0.000000e+00> : vector<16x16xf32>
    %4 = tpu.matmul %3, %3, %cst_3 {dimension_numbers = #tpu.dot_dimension_numbers<[1], [0], [0], [1], [0, 0, 1, 1], [], []>} : vector<16x16xf32>, vector<16x16xf32>, vector<16x16xf32> -> vector<16x16xf32>
    %cst_4 = arith.constant dense<0.000000e+00> : vector<16x16xf32>
    %5 = tpu.matmul %4, %3, %cst_4 {dimension_numbers = #tpu.dot_dimension_numbers<[1], [0], [0], [1], [0, 0, 1, 1], [], []>} : vector<16x16xf32>, vector<16x16xf32>, vector<16x16xf32> -> vector<16x16xf32>
    %cst_5 = arith.constant dense<0.000000e+00> : vector<16xf32>
    %6 = vector.multi_reduction <add>, %3, %cst_5 [0] : vector<16x16xf32> to vector<16xf32>
    %7 = vector.shape_cast %6 : vector<16xf32> to vector<1x16xf32>
    %cst_6 = arith.constant dense<0.000000e+00> : vector<16xf32>
    %8 = vector.multi_reduction <add>, %3, %cst_6 [1] : vector<16x16xf32> to vector<16xf32>
    %9 = vector.shape_cast %8 : vector<16xf32> to vector<16x1xf32>
    %10 = arith.mulf %3, %3 : vector<16x16xf32>
    %cst_7 = arith.constant dense<0.000000e+00> : vector<16xf32>
    %11 = vector.multi_reduction <add>, %10, %cst_7 [0] : vector<16x16xf32> to vector<16xf32>
    %12 = vector.shape_cast %11 : vector<16xf32> to vector<1x16xf32>
    %13 = arith.mulf %3, %4 : vector<16x16xf32>
    %cst_8 = arith.constant dense<0.000000e+00> : vector<16xf32>
    %14 = vector.multi_reduction <add>, %13, %cst_8 [0] : vector<16x16xf32> to vector<16xf32>
    %15 = vector.shape_cast %14 : vector<16xf32> to vector<1x16xf32>
    %16 = arith.mulf %4, %4 : vector<16x16xf32>
    %cst_9 = arith.constant dense<0.000000e+00> : vector<16xf32>
    %17 = vector.multi_reduction <add>, %16, %cst_9 [0] : vector<16x16xf32> to vector<16xf32>
    %18 = vector.shape_cast %17 : vector<16xf32> to vector<1x16xf32>
    %19 = arith.mulf %4, %5 : vector<16x16xf32>
    %cst_10 = arith.constant dense<0.000000e+00> : vector<16xf32>
    %20 = vector.multi_reduction <add>, %19, %cst_10 [0] : vector<16x16xf32> to vector<16xf32>
    %21 = vector.shape_cast %20 : vector<16xf32> to vector<1x16xf32>
    %22 = arith.mulf %5, %5 : vector<16x16xf32>
    %cst_11 = arith.constant dense<0.000000e+00> : vector<16xf32>
    %23 = vector.multi_reduction <add>, %22, %cst_11 [0] : vector<16x16xf32> to vector<16xf32>
    %24 = vector.shape_cast %23 : vector<16xf32> to vector<1x16xf32>
    %25 = vector.broadcast %9 : vector<16x1xf32> to vector<16x16xf32>
    %26 = arith.mulf %3, %25 : vector<16x16xf32>
    %cst_12 = arith.constant dense<0.000000e+00> : vector<16xf32>
    %27 = vector.multi_reduction <add>, %26, %cst_12 [0] : vector<16x16xf32> to vector<16xf32>
    %28 = vector.shape_cast %27 : vector<16xf32> to vector<1x16xf32>
    %29 = arith.mulf %3, %4 : vector<16x16xf32>
    %cst_13 = arith.constant dense<0.000000e+00> : vector<16xf32>
    %30 = vector.multi_reduction <add>, %29, %cst_13 [1] : vector<16x16xf32> to vector<16xf32>
    %31 = vector.shape_cast %30 : vector<16xf32> to vector<16x1xf32>
    %32 = vector.broadcast %31 : vector<16x1xf32> to vector<16x16xf32>
    %33 = arith.mulf %3, %32 : vector<16x16xf32>
    %cst_14 = arith.constant dense<0.000000e+00> : vector<16xf32>
    %34 = vector.multi_reduction <add>, %33, %cst_14 [0] : vector<16x16xf32> to vector<16xf32>
    %35 = vector.shape_cast %34 : vector<16xf32> to vector<1x16xf32>
    %cst_15 = arith.constant 2.000000e+00 : f32
    %36 = vector.broadcast %cst_15 : f32 to vector<1x16xf32>
    %37 = arith.divf %15, %36 : vector<1x16xf32>
    %38 = vector.shape_cast %15 : vector<1x16xf32> to vector<1x1x16xf32>
    %cst_16 = arith.constant dense<0.000000e+00> : vector<1xf32>
    %39 = vector.multi_reduction <add>, %38, %cst_16 [1, 2] : vector<1x1x16xf32> to vector<1xf32>
    %40 = vector.shape_cast %39 : vector<1xf32> to vector<1x1x1xf32>
    %41 = vector.extract %40[0, 0, 0] : f32 from vector<1x1x1xf32>
    %cst_17 = arith.constant 6.000000e+00 : f32
    %42 = arith.divf %41, %cst_17 : f32
    %cst_18 = arith.constant 1.000000e+00 : f32
    %43 = vector.broadcast %cst_18 : f32 to vector<1x16xf32>
    %44 = arith.subf %7, %43 : vector<1x16xf32>
    %45 = arith.mulf %7, %44 : vector<1x16xf32>
    %46 = arith.subf %18, %45 : vector<1x16xf32>
    %47 = arith.subf %46, %28 : vector<1x16xf32>
    %48 = vector.shape_cast %47 : vector<1x16xf32> to vector<1x1x16xf32>
    %cst_19 = arith.constant dense<0.000000e+00> : vector<1xf32>
    %49 = vector.multi_reduction <add>, %48, %cst_19 [1, 2] : vector<1x1x16xf32> to vector<1xf32>
    %50 = vector.shape_cast %49 : vector<1xf32> to vector<1x1x1xf32>
    %51 = vector.extract %50[0, 0, 0] : f32 from vector<1x1x1xf32>
    %cst_20 = arith.constant 8.000000e+00 : f32
    %52 = arith.divf %51, %cst_20 : f32
    %cst_21 = arith.constant 2.000000e+00 : f32
    %53 = vector.broadcast %cst_21 : f32 to vector<1x16xf32>
    %54 = arith.divf %47, %53 : vector<1x16xf32>
    %cst_22 = arith.constant 2.000000e+00 : f32
    %55 = vector.broadcast %cst_22 : f32 to vector<1x16xf32>
    %56 = arith.mulf %55, %15 : vector<1x16xf32>
    %57 = arith.mulf %56, %7 : vector<1x16xf32>
    %58 = arith.subf %21, %57 : vector<1x16xf32>
    %59 = arith.subf %58, %35 : vector<1x16xf32>
    %60 = arith.addf %59, %15 : vector<1x16xf32>
    %61 = vector.shape_cast %60 : vector<1x16xf32> to vector<1x1x16xf32>
    %cst_23 = arith.constant dense<0.000000e+00> : vector<1xf32>
    %62 = vector.multi_reduction <add>, %61, %cst_23 [1, 2] : vector<1x1x16xf32> to vector<1xf32>
    %63 = vector.shape_cast %62 : vector<1xf32> to vector<1x1x1xf32>
    %64 = vector.extract %63[0, 0, 0] : f32 from vector<1x1x1xf32>
    %cst_24 = arith.constant 1.000000e+01 : f32
    %65 = arith.divf %64, %cst_24 : f32
    %cst_25 = arith.constant 2.000000e+00 : f32
    %66 = vector.broadcast %cst_25 : f32 to vector<1x16xf32>
    %67 = arith.divf %60, %66 : vector<1x16xf32>
    %68 = vector.shape_cast %24 : vector<1x16xf32> to vector<1x1x16xf32>
    %cst_26 = arith.constant dense<0.000000e+00> : vector<1xf32>
    %69 = vector.multi_reduction <add>, %68, %cst_26 [1, 2] : vector<1x1x16xf32> to vector<1xf32>
    %70 = vector.shape_cast %69 : vector<1xf32> to vector<1x1x1xf32>
    %71 = vector.extract %70[0, 0, 0] : f32 from vector<1x1x1xf32>
    %72 = arith.mulf %15, %15 : vector<1x16xf32>
    %73 = vector.shape_cast %72 : vector<1x16xf32> to vector<1x1x16xf32>
    %cst_27 = arith.constant dense<0.000000e+00> : vector<1xf32>
    %74 = vector.multi_reduction <add>, %73, %cst_27 [1, 2] : vector<1x1x16xf32> to vector<1xf32>
    %75 = vector.shape_cast %74 : vector<1xf32> to vector<1x1x1xf32>
    %76 = vector.extract %75[0, 0, 0] : f32 from vector<1x1x1xf32>
    %77 = arith.mulf %3, %4 : vector<16x16xf32>
    %78 = arith.mulf %77, %4 : vector<16x16xf32>
    %79 = vector.shape_cast %78 : vector<16x16xf32> to vector<1x16x16xf32>
    %cst_28 = arith.constant dense<0.000000e+00> : vector<1xf32>
    %80 = vector.multi_reduction <add>, %79, %cst_28 [1, 2] : vector<1x16x16xf32> to vector<1xf32>
    %81 = vector.shape_cast %80 : vector<1xf32> to vector<1x1x1xf32>
    %82 = vector.extract %81[0, 0, 0] : f32 from vector<1x1x1xf32>
    %83 = arith.mulf %12, %18 : vector<1x16xf32>
    %84 = vector.shape_cast %83 : vector<1x16xf32> to vector<1x1x16xf32>
    %cst_29 = arith.constant dense<0.000000e+00> : vector<1xf32>
    %85 = vector.multi_reduction <add>, %84, %cst_29 [1, 2] : vector<1x1x16xf32> to vector<1xf32>
    %86 = vector.shape_cast %85 : vector<1xf32> to vector<1x1x1xf32>
    %87 = vector.extract %86[0, 0, 0] : f32 from vector<1x1x1xf32>
    %88 = vector.shape_cast %18 : vector<1x16xf32> to vector<1x1x16xf32>
    %cst_30 = arith.constant dense<0.000000e+00> : vector<1xf32>
    %89 = vector.multi_reduction <add>, %88, %cst_30 [1, 2] : vector<1x1x16xf32> to vector<1xf32>
    %90 = vector.shape_cast %89 : vector<1xf32> to vector<1x1x1xf32>
    %91 = vector.extract %90[0, 0, 0] : f32 from vector<1x1x1xf32>
    %92 = vector.shape_cast %15 : vector<1x16xf32> to vector<1x1x16xf32>
    %cst_31 = arith.constant dense<0.000000e+00> : vector<1xf32>
    %93 = vector.multi_reduction <add>, %92, %cst_31 [1, 2] : vector<1x1x16xf32> to vector<1xf32>
    %94 = vector.shape_cast %93 : vector<1xf32> to vector<1x1x1xf32>
    %95 = vector.extract %94[0, 0, 0] : f32 from vector<1x1x1xf32>
    %96 = arith.mulf %12, %12 : vector<1x16xf32>
    %97 = arith.mulf %12, %96 : vector<1x16xf32>
    %98 = vector.shape_cast %97 : vector<1x16xf32> to vector<1x1x16xf32>
    %cst_32 = arith.constant dense<0.000000e+00> : vector<1xf32>
    %99 = vector.multi_reduction <add>, %98, %cst_32 [1, 2] : vector<1x1x16xf32> to vector<1xf32>
    %100 = vector.shape_cast %99 : vector<1xf32> to vector<1x1x1xf32>
    %101 = vector.extract %100[0, 0, 0] : f32 from vector<1x1x1xf32>
    %102 = vector.shape_cast %5 : vector<16x16xf32> to vector<1x16x16xf32>
    %cst_33 = arith.constant dense<0.000000e+00> : vector<1xf32>
    %103 = vector.multi_reduction <add>, %102, %cst_33 [1, 2] : vector<1x16x16xf32> to vector<1xf32>
    %104 = vector.shape_cast %103 : vector<1xf32> to vector<1x1x1xf32>
    %105 = vector.extract %104[0, 0, 0] : f32 from vector<1x1x1xf32>
    %106 = arith.mulf %12, %12 : vector<1x16xf32>
    %107 = vector.shape_cast %106 : vector<1x16xf32> to vector<1x1x16xf32>
    %cst_34 = arith.constant dense<0.000000e+00> : vector<1xf32>
    %108 = vector.multi_reduction <add>, %107, %cst_34 [1, 2] : vector<1x1x16xf32> to vector<1xf32>
    %109 = vector.shape_cast %108 : vector<1xf32> to vector<1x1x1xf32>
    %110 = vector.extract %109[0, 0, 0] : f32 from vector<1x1x1xf32>
    %111 = vector.shape_cast %12 : vector<1x16xf32> to vector<1x1x16xf32>
    %cst_35 = arith.constant dense<0.000000e+00> : vector<1xf32>
    %112 = vector.multi_reduction <add>, %111, %cst_35 [1, 2] : vector<1x1x16xf32> to vector<1xf32>
    %113 = vector.shape_cast %112 : vector<1xf32> to vector<1x1x1xf32>
    %114 = vector.extract %113[0, 0, 0] : f32 from vector<1x1x1xf32>
    %cst_36 = arith.constant 3.000000e+00 : f32
    %115 = arith.mulf %cst_36, %76 : f32
    %116 = arith.subf %71, %115 : f32
    %cst_37 = arith.constant 9.000000e+00 : f32
    %117 = arith.mulf %cst_37, %82 : f32
    %118 = arith.addf %116, %117 : f32
    %cst_38 = arith.constant 6.000000e+00 : f32
    %119 = arith.mulf %cst_38, %87 : f32
    %120 = arith.subf %118, %119 : f32
    %cst_39 = arith.constant 6.000000e+00 : f32
    %121 = arith.mulf %cst_39, %91 : f32
    %122 = arith.addf %120, %121 : f32
    %cst_40 = arith.constant 4.000000e+00 : f32
    %123 = arith.mulf %cst_40, %95 : f32
    %124 = arith.subf %122, %123 : f32
    %cst_41 = arith.constant 4.000000e+00 : f32
    %125 = arith.mulf %cst_41, %101 : f32
    %126 = arith.addf %124, %125 : f32
    %cst_42 = arith.constant 3.000000e+00 : f32
    %127 = arith.mulf %cst_42, %105 : f32
    %128 = arith.addf %126, %127 : f32
    %cst_43 = arith.constant 1.200000e+01 : f32
    %129 = arith.mulf %cst_43, %110 : f32
    %130 = arith.subf %128, %129 : f32
    %cst_44 = arith.constant 5.000000e+00 : f32
    %131 = arith.mulf %cst_44, %114 : f32
    %132 = arith.addf %130, %131 : f32
    %cst_45 = arith.constant 1.200000e+01 : f32
    %133 = arith.divf %132, %cst_45 : f32
    %134 = vector.broadcast %42 : f32 to vector<1x16xf32>
    %135 = arith.mulf %134, %0 : vector<1x16xf32>
    %136 = vector.broadcast %52 : f32 to vector<1x16xf32>
    %137 = arith.mulf %136, %0 : vector<1x16xf32>
    %138 = vector.broadcast %65 : f32 to vector<1x16xf32>
    %139 = arith.mulf %138, %0 : vector<1x16xf32>
    %140 = vector.broadcast %133 : f32 to vector<1x16xf32>
    %141 = arith.mulf %140, %0 : vector<1x16xf32>
    %142 = tpu.concatenate %37, %54, %67, %135, %137, %139, %141, %1 in 1 : vector<1x16xf32>, vector<1x16xf32>, vector<1x16xf32>, vector<1x16xf32>, vector<1x16xf32>, vector<1x16xf32>, vector<1x16xf32>, vector<1x16xf32> -> vector<1x128xf32>
    %c1 = arith.constant 1 : index
    %c0_46 = arith.constant 0 : index
    %c0_47 = arith.constant 0 : index
    %143 = vector.load %arg1[%c1, %c0_46, %c0_47] : memref<2x16x16xf32, #tpu.memory_space<vmem>>, vector<1x16x16xf32>
    %144 = vector.shape_cast %143 : vector<1x16x16xf32> to vector<16x16xf32>
    %cst_48 = arith.constant dense<0.000000e+00> : vector<16x16xf32>
    %145 = tpu.matmul %144, %144, %cst_48 {dimension_numbers = #tpu.dot_dimension_numbers<[1], [0], [0], [1], [0, 0, 1, 1], [], []>} : vector<16x16xf32>, vector<16x16xf32>, vector<16x16xf32> -> vector<16x16xf32>
    %cst_49 = arith.constant dense<0.000000e+00> : vector<16x16xf32>
    %146 = tpu.matmul %145, %144, %cst_49 {dimension_numbers = #tpu.dot_dimension_numbers<[1], [0], [0], [1], [0, 0, 1, 1], [], []>} : vector<16x16xf32>, vector<16x16xf32>, vector<16x16xf32> -> vector<16x16xf32>
    %cst_50 = arith.constant dense<0.000000e+00> : vector<16xf32>
    %147 = vector.multi_reduction <add>, %144, %cst_50 [0] : vector<16x16xf32> to vector<16xf32>
    %148 = vector.shape_cast %147 : vector<16xf32> to vector<1x16xf32>
    %cst_51 = arith.constant dense<0.000000e+00> : vector<16xf32>
    %149 = vector.multi_reduction <add>, %144, %cst_51 [1] : vector<16x16xf32> to vector<16xf32>
    %150 = vector.shape_cast %149 : vector<16xf32> to vector<16x1xf32>
    %151 = arith.mulf %144, %144 : vector<16x16xf32>
    %cst_52 = arith.constant dense<0.000000e+00> : vector<16xf32>
    %152 = vector.multi_reduction <add>, %151, %cst_52 [0] : vector<16x16xf32> to vector<16xf32>
    %153 = vector.shape_cast %152 : vector<16xf32> to vector<1x16xf32>
    %154 = arith.mulf %144, %145 : vector<16x16xf32>
    %cst_53 = arith.constant dense<0.000000e+00> : vector<16xf32>
    %155 = vector.multi_reduction <add>, %154, %cst_53 [0] : vector<16x16xf32> to vector<16xf32>
    %156 = vector.shape_cast %155 : vector<16xf32> to vector<1x16xf32>
    %157 = arith.mulf %145, %145 : vector<16x16xf32>
    %cst_54 = arith.constant dense<0.000000e+00> : vector<16xf32>
    %158 = vector.multi_reduction <add>, %157, %cst_54 [0] : vector<16x16xf32> to vector<16xf32>
    %159 = vector.shape_cast %158 : vector<16xf32> to vector<1x16xf32>
    %160 = arith.mulf %145, %146 : vector<16x16xf32>
    %cst_55 = arith.constant dense<0.000000e+00> : vector<16xf32>
    %161 = vector.multi_reduction <add>, %160, %cst_55 [0] : vector<16x16xf32> to vector<16xf32>
    %162 = vector.shape_cast %161 : vector<16xf32> to vector<1x16xf32>
    %163 = arith.mulf %146, %146 : vector<16x16xf32>
    %cst_56 = arith.constant dense<0.000000e+00> : vector<16xf32>
    %164 = vector.multi_reduction <add>, %163, %cst_56 [0] : vector<16x16xf32> to vector<16xf32>
    %165 = vector.shape_cast %164 : vector<16xf32> to vector<1x16xf32>
    %166 = vector.broadcast %150 : vector<16x1xf32> to vector<16x16xf32>
    %167 = arith.mulf %144, %166 : vector<16x16xf32>
    %cst_57 = arith.constant dense<0.000000e+00> : vector<16xf32>
    %168 = vector.multi_reduction <add>, %167, %cst_57 [0] : vector<16x16xf32> to vector<16xf32>
    %169 = vector.shape_cast %168 : vector<16xf32> to vector<1x16xf32>
    %170 = arith.mulf %144, %145 : vector<16x16xf32>
    %cst_58 = arith.constant dense<0.000000e+00> : vector<16xf32>
    %171 = vector.multi_reduction <add>, %170, %cst_58 [1] : vector<16x16xf32> to vector<16xf32>
    %172 = vector.shape_cast %171 : vector<16xf32> to vector<16x1xf32>
    %173 = vector.broadcast %172 : vector<16x1xf32> to vector<16x16xf32>
    %174 = arith.mulf %144, %173 : vector<16x16xf32>
    %cst_59 = arith.constant dense<0.000000e+00> : vector<16xf32>
    %175 = vector.multi_reduction <add>, %174, %cst_59 [0] : vector<16x16xf32> to vector<16xf32>
    %176 = vector.shape_cast %175 : vector<16xf32> to vector<1x16xf32>
    %cst_60 = arith.constant 2.000000e+00 : f32
    %177 = vector.broadcast %cst_60 : f32 to vector<1x16xf32>
    %178 = arith.divf %156, %177 : vector<1x16xf32>
    %179 = vector.shape_cast %156 : vector<1x16xf32> to vector<1x1x16xf32>
    %cst_61 = arith.constant dense<0.000000e+00> : vector<1xf32>
    %180 = vector.multi_reduction <add>, %179, %cst_61 [1, 2] : vector<1x1x16xf32> to vector<1xf32>
    %181 = vector.shape_cast %180 : vector<1xf32> to vector<1x1x1xf32>
    %182 = vector.extract %181[0, 0, 0] : f32 from vector<1x1x1xf32>
    %cst_62 = arith.constant 6.000000e+00 : f32
    %183 = arith.divf %182, %cst_62 : f32
    %cst_63 = arith.constant 1.000000e+00 : f32
    %184 = vector.broadcast %cst_63 : f32 to vector<1x16xf32>
    %185 = arith.subf %148, %184 : vector<1x16xf32>
    %186 = arith.mulf %148, %185 : vector<1x16xf32>
    %187 = arith.subf %159, %186 : vector<1x16xf32>
    %188 = arith.subf %187, %169 : vector<1x16xf32>
    %189 = vector.shape_cast %188 : vector<1x16xf32> to vector<1x1x16xf32>
    %cst_64 = arith.constant dense<0.000000e+00> : vector<1xf32>
    %190 = vector.multi_reduction <add>, %189, %cst_64 [1, 2] : vector<1x1x16xf32> to vector<1xf32>
    %191 = vector.shape_cast %190 : vector<1xf32> to vector<1x1x1xf32>
    %192 = vector.extract %191[0, 0, 0] : f32 from vector<1x1x1xf32>
    %cst_65 = arith.constant 8.000000e+00 : f32
    %193 = arith.divf %192, %cst_65 : f32
    %cst_66 = arith.constant 2.000000e+00 : f32
    %194 = vector.broadcast %cst_66 : f32 to vector<1x16xf32>
    %195 = arith.divf %188, %194 : vector<1x16xf32>
    %cst_67 = arith.constant 2.000000e+00 : f32
    %196 = vector.broadcast %cst_67 : f32 to vector<1x16xf32>
    %197 = arith.mulf %196, %156 : vector<1x16xf32>
    %198 = arith.mulf %197, %148 : vector<1x16xf32>
    %199 = arith.subf %162, %198 : vector<1x16xf32>
    %200 = arith.subf %199, %176 : vector<1x16xf32>
    %201 = arith.addf %200, %156 : vector<1x16xf32>
    %202 = vector.shape_cast %201 : vector<1x16xf32> to vector<1x1x16xf32>
    %cst_68 = arith.constant dense<0.000000e+00> : vector<1xf32>
    %203 = vector.multi_reduction <add>, %202, %cst_68 [1, 2] : vector<1x1x16xf32> to vector<1xf32>
    %204 = vector.shape_cast %203 : vector<1xf32> to vector<1x1x1xf32>
    %205 = vector.extract %204[0, 0, 0] : f32 from vector<1x1x1xf32>
    %cst_69 = arith.constant 1.000000e+01 : f32
    %206 = arith.divf %205, %cst_69 : f32
    %cst_70 = arith.constant 2.000000e+00 : f32
    %207 = vector.broadcast %cst_70 : f32 to vector<1x16xf32>
    %208 = arith.divf %201, %207 : vector<1x16xf32>
    %209 = vector.shape_cast %165 : vector<1x16xf32> to vector<1x1x16xf32>
    %cst_71 = arith.constant dense<0.000000e+00> : vector<1xf32>
    %210 = vector.multi_reduction <add>, %209, %cst_71 [1, 2] : vector<1x1x16xf32> to vector<1xf32>
    %211 = vector.shape_cast %210 : vector<1xf32> to vector<1x1x1xf32>
    %212 = vector.extract %211[0, 0, 0] : f32 from vector<1x1x1xf32>
    %213 = arith.mulf %156, %156 : vector<1x16xf32>
    %214 = vector.shape_cast %213 : vector<1x16xf32> to vector<1x1x16xf32>
    %cst_72 = arith.constant dense<0.000000e+00> : vector<1xf32>
    %215 = vector.multi_reduction <add>, %214, %cst_72 [1, 2] : vector<1x1x16xf32> to vector<1xf32>
    %216 = vector.shape_cast %215 : vector<1xf32> to vector<1x1x1xf32>
    %217 = vector.extract %216[0, 0, 0] : f32 from vector<1x1x1xf32>
    %218 = arith.mulf %144, %145 : vector<16x16xf32>
    %219 = arith.mulf %218, %145 : vector<16x16xf32>
    %220 = vector.shape_cast %219 : vector<16x16xf32> to vector<1x16x16xf32>
    %cst_73 = arith.constant dense<0.000000e+00> : vector<1xf32>
    %221 = vector.multi_reduction <add>, %220, %cst_73 [1, 2] : vector<1x16x16xf32> to vector<1xf32>
    %222 = vector.shape_cast %221 : vector<1xf32> to vector<1x1x1xf32>
    %223 = vector.extract %222[0, 0, 0] : f32 from vector<1x1x1xf32>
    %224 = arith.mulf %153, %159 : vector<1x16xf32>
    %225 = vector.shape_cast %224 : vector<1x16xf32> to vector<1x1x16xf32>
    %cst_74 = arith.constant dense<0.000000e+00> : vector<1xf32>
    %226 = vector.multi_reduction <add>, %225, %cst_74 [1, 2] : vector<1x1x16xf32> to vector<1xf32>
    %227 = vector.shape_cast %226 : vector<1xf32> to vector<1x1x1xf32>
    %228 = vector.extract %227[0, 0, 0] : f32 from vector<1x1x1xf32>
    %229 = vector.shape_cast %159 : vector<1x16xf32> to vector<1x1x16xf32>
    %cst_75 = arith.constant dense<0.000000e+00> : vector<1xf32>
    %230 = vector.multi_reduction <add>, %229, %cst_75 [1, 2] : vector<1x1x16xf32> to vector<1xf32>
    %231 = vector.shape_cast %230 : vector<1xf32> to vector<1x1x1xf32>
    %232 = vector.extract %231[0, 0, 0] : f32 from vector<1x1x1xf32>
    %233 = vector.shape_cast %156 : vector<1x16xf32> to vector<1x1x16xf32>
    %cst_76 = arith.constant dense<0.000000e+00> : vector<1xf32>
    %234 = vector.multi_reduction <add>, %233, %cst_76 [1, 2] : vector<1x1x16xf32> to vector<1xf32>
    %235 = vector.shape_cast %234 : vector<1xf32> to vector<1x1x1xf32>
    %236 = vector.extract %235[0, 0, 0] : f32 from vector<1x1x1xf32>
    %237 = arith.mulf %153, %153 : vector<1x16xf32>
    %238 = arith.mulf %153, %237 : vector<1x16xf32>
    %239 = vector.shape_cast %238 : vector<1x16xf32> to vector<1x1x16xf32>
    %cst_77 = arith.constant dense<0.000000e+00> : vector<1xf32>
    %240 = vector.multi_reduction <add>, %239, %cst_77 [1, 2] : vector<1x1x16xf32> to vector<1xf32>
    %241 = vector.shape_cast %240 : vector<1xf32> to vector<1x1x1xf32>
    %242 = vector.extract %241[0, 0, 0] : f32 from vector<1x1x1xf32>
    %243 = vector.shape_cast %146 : vector<16x16xf32> to vector<1x16x16xf32>
    %cst_78 = arith.constant dense<0.000000e+00> : vector<1xf32>
    %244 = vector.multi_reduction <add>, %243, %cst_78 [1, 2] : vector<1x16x16xf32> to vector<1xf32>
    %245 = vector.shape_cast %244 : vector<1xf32> to vector<1x1x1xf32>
    %246 = vector.extract %245[0, 0, 0] : f32 from vector<1x1x1xf32>
    %247 = arith.mulf %153, %153 : vector<1x16xf32>
    %248 = vector.shape_cast %247 : vector<1x16xf32> to vector<1x1x16xf32>
    %cst_79 = arith.constant dense<0.000000e+00> : vector<1xf32>
    %249 = vector.multi_reduction <add>, %248, %cst_79 [1, 2] : vector<1x1x16xf32> to vector<1xf32>
    %250 = vector.shape_cast %249 : vector<1xf32> to vector<1x1x1xf32>
    %251 = vector.extract %250[0, 0, 0] : f32 from vector<1x1x1xf32>
    %252 = vector.shape_cast %153 : vector<1x16xf32> to vector<1x1x16xf32>
    %cst_80 = arith.constant dense<0.000000e+00> : vector<1xf32>
    %253 = vector.multi_reduction <add>, %252, %cst_80 [1, 2] : vector<1x1x16xf32> to vector<1xf32>
    %254 = vector.shape_cast %253 : vector<1xf32> to vector<1x1x1xf32>
    %255 = vector.extract %254[0, 0, 0] : f32 from vector<1x1x1xf32>
    %cst_81 = arith.constant 3.000000e+00 : f32
    %256 = arith.mulf %cst_81, %217 : f32
    %257 = arith.subf %212, %256 : f32
    %cst_82 = arith.constant 9.000000e+00 : f32
    %258 = arith.mulf %cst_82, %223 : f32
    %259 = arith.addf %257, %258 : f32
    %cst_83 = arith.constant 6.000000e+00 : f32
    %260 = arith.mulf %cst_83, %228 : f32
    %261 = arith.subf %259, %260 : f32
    %cst_84 = arith.constant 6.000000e+00 : f32
    %262 = arith.mulf %cst_84, %232 : f32
    %263 = arith.addf %261, %262 : f32
    %cst_85 = arith.constant 4.000000e+00 : f32
    %264 = arith.mulf %cst_85, %236 : f32
    %265 = arith.subf %263, %264 : f32
    %cst_86 = arith.constant 4.000000e+00 : f32
    %266 = arith.mulf %cst_86, %242 : f32
    %267 = arith.addf %265, %266 : f32
    %cst_87 = arith.constant 3.000000e+00 : f32
    %268 = arith.mulf %cst_87, %246 : f32
    %269 = arith.addf %267, %268 : f32
    %cst_88 = arith.constant 1.200000e+01 : f32
    %270 = arith.mulf %cst_88, %251 : f32
    %271 = arith.subf %269, %270 : f32
    %cst_89 = arith.constant 5.000000e+00 : f32
    %272 = arith.mulf %cst_89, %255 : f32
    %273 = arith.addf %271, %272 : f32
    %cst_90 = arith.constant 1.200000e+01 : f32
    %274 = arith.divf %273, %cst_90 : f32
    %275 = vector.broadcast %183 : f32 to vector<1x16xf32>
    %276 = arith.mulf %275, %0 : vector<1x16xf32>
    %277 = vector.broadcast %193 : f32 to vector<1x16xf32>
    %278 = arith.mulf %277, %0 : vector<1x16xf32>
    %279 = vector.broadcast %206 : f32 to vector<1x16xf32>
    %280 = arith.mulf %279, %0 : vector<1x16xf32>
    %281 = vector.broadcast %274 : f32 to vector<1x16xf32>
    %282 = arith.mulf %281, %0 : vector<1x16xf32>
    %283 = tpu.concatenate %178, %195, %208, %276, %278, %280, %282, %1 in 1 : vector<1x16xf32>, vector<1x16xf32>, vector<1x16xf32>, vector<1x16xf32>, vector<1x16xf32>, vector<1x16xf32>, vector<1x16xf32>, vector<1x16xf32> -> vector<1x128xf32>
    %284 = tpu.concatenate %142, %283 in 0 : vector<1x128xf32>, vector<1x128xf32> -> vector<2x128xf32>
    %c0_91 = arith.constant 0 : index
    %c0_92 = arith.constant 0 : index
    %285 = vector.load %arg2[%c0_91, %c0_92] : memref<2x128xf32, #tpu.memory_space<vmem>>, vector<2x128xf32>
    tpu.vector_store %arg2[%c0_91, %c0_92], %284 {strides = array<i32>} : memref<2x128xf32, #tpu.memory_space<vmem>>, vector<2x128xf32>,
    return
  }
  func.func @transform_0(%arg0: i32) -> (i32, i32, i32) {
    %c0_i32 = arith.constant 0 : i32
    %c0_i32_0 = arith.constant 0 : i32
    %c0_i32_1 = arith.constant 0 : i32
    return %arg0, %c0_i32, %c0_i32_0 : i32, i32, i32
  }
  func.func @transform_1(%arg0: i32) -> (i32, i32) {
    %c0_i32 = arith.constant 0 : i32
    %c0_i32_0 = arith.constant 0 : i32
    return %arg0, %c0_i32 : i32, i32
  }
}

</mosaic_0001>

<bundles_post_ra>
// kernel: tpu_custom_call.1
= control target key start
LH: loop header
LB: loop body
LE: loop exit
PB: predicated region body
PF: predicated region fallthrough
CT: control target
= control target key end

     0   :  { %s1402_s0 = inlined_call_operand.hbm [shape: f32[2,16,16], index: 0, kind: input, shape index: {}]   ;;  %s1403_s1 = inlined_call_operand.hbm [shape: f32[2,128], index: 1, kind: output, shape index: {}]  }
   0x1   :  { %1404 = sst [smem:[#allocation8_spill]] %s1403_s1 }
   0x2   :  { %6 = vsyncpa [#allocation3], 0 }
   0x3   :  { %7 = vsyncpa [#allocation4], 0  ;;  %s1104_s6 = smov [#allocation2]  }
   0x4   :  { %s13_s7 = sshll.u32 %s1104_s6, 4  ;;  %s14_s7 = int_to_ptr.vmem [resolvable:$true] %s13_s7 }
   0x5   :  { %s1068_s8 = scalar_lea.vmem %s14_s7, 512  ;;  %p1073_p1 = scmp.lt.s32.totalorder %s14_s7, %s14_s7 }
   0x6   :  { %p1069_p0 = scmp.ne.s32.totalorder %s14_s7, %s1068_s8  ;;  %p1074_p2 = scmp.lt.s32.totalorder %s1068_s8, %s1068_s8 }
   0x8   :  { %p1075_p3 = por %p1074_p2, %p1073_p1 }
   0xa   :  { %p1076_p4 = pnand %p1075_p3, %p1069_p0 }
   0xc   :  { %1079 = shalt.err (!%p1076_p4)
}
   0xd   :  { %s1105_s9 = smov 128   ;;  %s1106_s10 = smov 8  }
   0xe   :  { %19 = dma.hbm_to_vmem [thread:$0]  %s1402_s0, 512, %s14_s7, [#allocation3], %s1105_s9, %s1105_s9, %s1106_s10  }
   0xf   :  { %1100 = dma.done.wait [#allocation3], 512  }
  0x10   :  { %1101 = vsyncadd [#allocation3], 4294966784  ;;  %vm25_vm0 = vcmask 130048   ;;  %v1123_v0 = vld [vmem:[#allocation2 + $0x8] sm:$0xff]  ;;  %v1125_v1 = vld [vmem:[#allocation2] sm:$0xff]  ;;  %vm284_vm1 = vcmask 122880  }
  0x11   :  { %978 = vmatprep.subr.mxu0 %v1123_v0  ;;  %982 = vmatprep.mubr.msk.f32.mxu0 %vm25_vm0, %v1125_v1  ;;  %v189_v2 = vsel %vm25_vm0, %v1123_v0, 0.0  ;;  %v188_v3 = vsel %vm25_vm0, %v1125_v1, 0.0  ;;  %v1135_v4 = vld [vmem:[#allocation2 + $0x18] sm:$0xff]  ;;  %v1138_v6 = vld [vmem:[#allocation2 + $0x10] sm:$0xff]  ;;  %v201_v7 = vmul.f32 %v1125_v1, %v1125_v1  ;;  %v202_v8 = vmul.f32 %v1123_v0, %v1123_v0  ;;  %s1107_s0 = smov 16   ;;  %s1108_s13 = smov 32  }
  0x12   :  { %979 = vmatpush3.msra.mxu0 %v1123_v0  ;;  %199 = vadd.xlane.f32.xlu1 %v189_v2  ;;  %v190_v5 = vadd.f32 %v189_v2, %v188_v3  ;;  %v646_v61 = vsel %vm25_vm0, %v1138_v6, 0.0  ;;  %vm469_vm2 = vcmask 261120   ;;  %vm471_vm3 = vcmask 392192  }
  0x13   :  { %980 = vmatprep.subr.mxu0 %v1125_v1  ;;  %197 = vadd.xlane.f32.xlu0 %v188_v3  ;;  %v203_v9 = vsel %vm25_vm0, %v201_v7, 0.0  ;;  %v204_v10 = vsel %vm25_vm0, %v202_v8, 0.0  ;;  %vm473_vm4 = vcmask 523264   ;;  %vm475_vm5 = vcmask 654336  }
  0x14   :  { %981 = vmatpush3.msra.mxu0 %v1125_v1  ;;  %985 = vmatprep.subr.mxu1 %v1123_v0  ;;  %v205_v11 = vadd.f32 %v204_v10, %v203_v9  ;;  %v191_v14 = vrot.slane %v190_v5, 4  ;;  %vm477_vm6 = vcmask 785408   ;;  %vm479_vm7 = vcmask 916480  }
  0x15   :  { %983 = vmatmul.mubr.msk.f32.vlgmr.msra.gmra.mxu0 %vm25_vm0, %v1123_v0  ;;  %992 = vmatprep.subr.mxu0 %v1135_v4  ;;  %vm934_vm8 = vcmask 1040384  }
  0x16   :  { %993 = vmatpush3.msra.mxu0 %v1135_v4  ;;  %996 = vmatprep.mubr.msk.f32.mxu0 %vm25_vm0, %v1138_v6  ;;  %v206_v12 = vrot.slane %v205_v11, 4  ;;  %v192_v18 = vadd.f32 %v191_v14, %v190_v5 }
  0x17   :  { %994 = vmatprep.subr.mxu0 %v1138_v6  ;;  %986 = vmatpush3.msra.mxu1 %v1123_v0 }
  0x18   :  { %995 = vmatpush3.msra.mxu0 %v1138_v6  ;;  %987 = vmatprep.subr.mxu1 %v1125_v1  ;;  %v207_v13 = vadd.f32 %v206_v12, %v205_v11  ;;  %v193_v22 = vrot.slane %v192_v18, 2 }
  0x19   :  { %997 = vmatmul.mubr.msk.f32.vlgmr.msra.gmra.mxu0 %vm25_vm0, %v1135_v4  ;;  %988 = vmatpush3.msra.mxu1 %v1125_v1 }
  0x1a   :  { %999 = vmatprep.subr.mxu1 %v1135_v4  ;;  %v208_v15 = vrot.slane %v207_v13, 2  ;;  %v194_v27 = vadd.f32 %v193_v22, %v192_v18 }
  0x1c   :  { %v209_v21 = vadd.f32 %v208_v15, %v207_v13  ;;  %v195_v37 = vrot.slane %v194_v27, 1  ;;  %v647_v13 = vsel %vm25_vm0, %v1135_v4, 0.0 }
  0x1e   :  { %v210_v25 = vrot.slane %v209_v21, 1  ;;  %v1208_v53 = vadd.f32 %v195_v37, %v194_v27 }
  0x20   :  { %v1168_v29 = vadd.f32 %v210_v25, %v209_v21  ;;  %v956_v12 = vadd.f32 -1.0, %v1208_v53 }
  0x22   :  { %v391_v39 = vmul.f32 %v1168_v29, %v1168_v29  ;;  %v425_v18 = vsel %vm284_vm1, %v1168_v29, 0.0  ;;  %v299_v22 = vmul.f32 %v956_v12, %v1208_v53 }
  0x24   :  { %v392_v55 = vmul.f32 %v391_v39, %v1168_v29 }
  0x26   :  { %v393_v7 = vsel %vm284_vm1, %v392_v55, 0.0 }
  0x9b   :  { %v200_v16 = vpop.xlane.xlu1 %199 }
  0x9c   :  { %v198_v17 = vpop.xlane.xlu0 %197  ;;  %v257_v19 = vmul.f32 %v200_v16, %v1123_v0 }
  0x9d   :  { %v256_v20 = vmul.f32 %v198_v17, %v1125_v1 }
  0x9e   :  { %v259_v23 = vsel %vm25_vm0, %v257_v19, 0.0  ;;  %v415_v19 = vsel %vm284_vm1, %v391_v39, 0.0 }
  0x9f   :  { %v258_v24 = vsel %vm25_vm0, %v256_v20, 0.0 }
  0xa0   :  { %v260_v26 = vadd.f32 %v259_v23, %v258_v24 }
  0xa2   :  { %v261_v34 = vrot.slane %v260_v26, 4 }
  0xa4   :  { %v262_v47 = vadd.f32 %v261_v34, %v260_v26 }
  0xa6   :  { %v263_v60 = vrot.slane %v262_v47, 2 }
  0xa8   :  { %v264_v15 = vadd.f32 %v263_v60, %v262_v47 }
  0xaa   :  { %v265_v26 = vrot.slane %v264_v15, 1 }
  0xd5   :  { %v1166_v28 = vpop.f32.mrf.mxu0 }
  0xd6   :  { %v224_v30 = vmul.f32 %v1166_v28, %v1166_v28  ;;  %v1174_v31 = vmul.f32 %v1166_v28, %v1123_v0 }
  0xd7   :  { %v1176_v32 = vpop.f32.mrf.mxu0 }
  0xd8   :  { %v223_v33 = vmul.f32 %v1176_v32, %v1176_v32  ;;  %989 = vmatprep.mubr.msk.f32.mxu1 %vm25_vm0, %v1176_v32  ;;  %v215_v35 = vsel %vm25_vm0, %v1174_v31, 0.0  ;;  %v212_v36 = vmul.f32 %v1176_v32, %v1125_v1  ;;  %v226_v40 = vsel %vm25_vm0, %v224_v30, 0.0 }
  0xd9   :  { %269 = vadd.xlane.f32.xlu0 %v215_v35  ;;  %990 = vmatmul.mubr.msk.f32.vlgmr.msra.gmra.mxu1 %vm25_vm0, %v1166_v28  ;;  %v1188_v38 = vpop.f32.mrf.mxu0  ;;  %v357_v20 = vmul.f32 %v1166_v28, %v1174_v31 }
  0xda   :  { %v225_v41 = vsel %vm25_vm0, %v223_v33, 0.0  ;;  %1000 = vmatpush3.msra.mxu1 %v1135_v4  ;;  %v671_v42 = vmul.f32 %v1188_v38, %v1135_v4  ;;  %v214_v43 = vsel %vm25_vm0, %v212_v36, 0.0  ;;  %v356_v14 = vmul.f32 %v212_v36, %v1176_v32 }
  0xdb   :  { %v1198_v44 = vpop.f32.mrf.mxu0  ;;  %1001 = vmatprep.subr.mxu1 %v1138_v6  ;;  %v216_v45 = vadd.f32 %v215_v35, %v214_v43  ;;  %v227_v46 = vadd.f32 %v226_v40, %v225_v41  ;;  %v359_v27 = vsel %vm25_vm0, %v357_v20, 0.0  ;;  %v266_v35 = vadd.f32 %v265_v26, %v264_v15 }
  0xdc   :  { %1002 = vmatpush3.msra.mxu1 %v1138_v6  ;;  %1003 = vmatprep.mubr.msk.f32.mxu1 %vm25_vm0, %v1198_v44  ;;  %v673_v48 = vsel %vm25_vm0, %v671_v42, 0.0  ;;  %v670_v49 = vmul.f32 %v1198_v44, %v1138_v6  ;;  %v813_v52 = vmul.f32 %v1188_v38, %v671_v42  ;;  %v358_v24 = vsel %vm25_vm0, %v356_v14, 0.0 }
  0xdd   :  { %727 = vadd.xlane.f32.xlu1 %v673_v48  ;;  %267 = vadd.xlane.f32.xlu0 %v214_v43  ;;  %v217_v50 = vrot.slane %v216_v45, 4  ;;  %v228_v51 = vrot.slane %v227_v46, 4  ;;  %v360_v33 = vadd.f32 %v359_v27, %v358_v24 }
  0xde   :  { %1004 = vmatmul.mubr.msk.f32.vlgmr.msra.gmra.mxu1 %vm25_vm0, %v1188_v38  ;;  %v672_v54 = vsel %vm25_vm0, %v670_v49, 0.0  ;;  %v812_v56 = vmul.f32 %v670_v49, %v1198_v44  ;;  %v815_v5 = vsel %vm25_vm0, %v813_v52, 0.0  ;;  %v648_v49 = vadd.f32 %v647_v13, %v646_v61 }
  0xdf   :  { %v218_v57 = vadd.f32 %v217_v50, %v216_v45  ;;  %v674_v58 = vadd.f32 %v673_v48, %v672_v54  ;;  %v229_v59 = vadd.f32 %v228_v51, %v227_v46  ;;  %v681_v50 = vmul.f32 %v1198_v44, %v1198_v44 }
  0xe0   :  { %v814_v62 = vsel %vm25_vm0, %v812_v56, 0.0  ;;  %v682_v51 = vmul.f32 %v1188_v38, %v1188_v38  ;;  %v649_v52 = vrot.slane %v648_v49, 4 }
  0xe1   :  { %v219_v63 = vrot.slane %v218_v57, 2  ;;  %725 = vadd.xlane.f32.xlu1 %v672_v54  ;;  %v675_v2 = vrot.slane %v674_v58, 4  ;;  %655 = vadd.xlane.f32.xlu0 %v646_v61  ;;  %v230_v3 = vrot.slane %v229_v59, 2  ;;  %v1220_v8 = vadd.f32 %v815_v5, %v814_v62 }
  0xe2   :  { %v683_v54 = vsel %vm25_vm0, %v681_v50, 0.0  ;;  %v684_v55 = vsel %vm25_vm0, %v682_v51, 0.0 }
  0xe3   :  { %v220_v9 = vadd.f32 %v219_v63, %v218_v57  ;;  %v676_v10 = vadd.f32 %v675_v2, %v674_v58  ;;  %v231_v11 = vadd.f32 %v230_v3, %v229_v59  ;;  %v685_v56 = vadd.f32 %v684_v55, %v683_v54 }
  0xe4   :  { %v650_v57 = vadd.f32 %v649_v52, %v648_v49 }
  0xe5   :  { %v221_v16 = vrot.slane %v220_v9, 1  ;;  %657 = vadd.xlane.f32.xlu1 %v647_v13  ;;  %394 = vadd.xlane.f32.xlu0 %v393_v7  ;;  %v232_v17 = vrot.slane %v231_v11, 1  ;;  %v677_v21 = vrot.slane %v676_v10, 2  ;;  %v686_v59 = vrot.slane %v685_v56, 4 }
  0xe6   :  { %v651_v60 = vrot.slane %v650_v57, 2 }
  0xe7   :  { %v1232_v23 = vadd.f32 %v221_v16, %v220_v9  ;;  %v233_v25 = vadd.f32 %v232_v17, %v231_v11  ;;  %v678_v30 = vadd.f32 %v677_v21, %v676_v10  ;;  %v687_v2 = vadd.f32 %v686_v59, %v685_v56 }
  0xe8   :  { %v652_v61 = vadd.f32 %v651_v60, %v650_v57 }
  0xe9   :  { %426 = vadd.xlane.f32.xlu1 %v425_v18  ;;  %416 = vadd.xlane.f32.xlu0 %v415_v19  ;;  %v285_v34 = vsel %vm284_vm1, %v1232_v23, 0.0  ;;  %v345_v31 = vmul.f32 %v1232_v23, %v1232_v23  ;;  %v300_v36 = vsub.f32 %v233_v25, %v299_v22  ;;  %v679_v37 = vrot.slane %v678_v30, 1 }
  0xea   :  { %v381_v39 = vsel %vm284_vm1, %v233_v25, 0.0  ;;  %v370_v42 = vmul.f32 %v233_v25, %v1168_v29  ;;  %v688_v9 = vrot.slane %v687_v2, 2  ;;  %v653_v10 = vrot.slane %v652_v61, 1 }
  0xeb   :  { %v346_v40 = vsel %vm284_vm1, %v345_v31, 0.0  ;;  %v1242_v41 = vsub.f32 %v300_v36, %v266_v35  ;;  %v1245_v43 = vadd.f32 %v679_v37, %v678_v30 }
  0xec   :  { %v371_v46 = vsel %vm284_vm1, %v370_v42, 0.0  ;;  %v1267_v16 = vadd.f32 %v653_v10, %v652_v61  ;;  %v689_v20 = vadd.f32 %v688_v9, %v687_v2  ;;  %v659_v10 = vmul.f32 %v1138_v6, %v1138_v6 }
  0xed   :  { %361 = vadd.xlane.f32.xlu1 %v360_v33  ;;  %286 = vadd.xlane.f32.xlu0 %v285_v34  ;;  %v302_v45 = vsel %vm284_vm1, %v1242_v41, 0.0  ;;  %v741_v47 = vsel %vm284_vm1, %v1245_v43, 0.0  ;;  %v801_v48 = vmul.f32 %v1245_v43, %v1245_v43 }
  0xee   :  { %v690_v26 = vrot.slane %v689_v20, 1  ;;  %v961_v27 = vadd.f32 -1.0, %v1267_v16 }
  0xef   :  { %v802_v29 = vsel %vm284_vm1, %v801_v48, 0.0 }
  0xf0   :  { %v1278_v35 = vadd.f32 %v690_v26, %v689_v20  ;;  %v755_v37 = vmul.f32 %v961_v27, %v1267_v16 }
  0xf1   :  { %382 = vadd.xlane.f32.xlu1 %v381_v39  ;;  %347 = vadd.xlane.f32.xlu0 %v346_v40 }
  0xf5   :  { %303 = vadd.xlane.f32.xlu1 %v302_v45  ;;  %372 = vadd.xlane.f32.xlu0 %v371_v46 }
  0xf9   :  { %742 = vadd.xlane.f32.xlu0 %v741_v47  ;;  %v756_v47 = vsub.f32 %v1278_v35, %v755_v37 }
  0xfd   :  { %803 = vadd.xlane.f32.xlu0 %v802_v29 }
 0x162   :  { %v270_v58 = vpop.xlane.xlu0 %269 }
 0x163   :  { %v272_v60 = vmul.f32 %v270_v58, %v1123_v0  ;;  %v661_v58 = vsel %vm25_vm0, %v659_v10, 0.0 }
 0x166   :  { %v728_v62 = vpop.xlane.xlu1 %727  ;;  %v268_v63 = vpop.xlane.xlu0 %267 }
 0x167   :  { %v271_v59 = vmul.f32 %v268_v63, %v1125_v1 }
 0x169   :  { %v273_v2 = vsel %vm25_vm0, %v271_v59, 0.0 }
 0x16a   :  { %v726_v3 = vpop.xlane.xlu1 %725  ;;  %v656_v5 = vpop.xlane.xlu0 %655 }
 0x16b   :  { %v714_v7 = vmul.f32 %v656_v5, %v1138_v6  ;;  %v729_v61 = vmul.f32 %v726_v3, %v1138_v6  ;;  %v274_v5 = vsel %vm25_vm0, %v272_v60, 0.0 }
 0x16c   :  { %v275_v9 = vadd.f32 %v274_v5, %v273_v2 }
 0x16d   :  { %v716_v13 = vsel %vm25_vm0, %v714_v7, 0.0  ;;  %v730_v7 = vmul.f32 %v728_v62, %v1135_v4 }
 0x16e   :  { %v658_v11 = vpop.xlane.xlu1 %657  ;;  %v1262_v12 = vpop.xlane.xlu0 %394  ;;  %v276_v0 = vrot.slane %v275_v9, 4 }
 0x16f   :  { %v715_v14 = vmul.f32 %v658_v11, %v1135_v4  ;;  %v660_v11 = vmul.f32 %v1135_v4, %v1135_v4  ;;  %v732_v1 = vsel %vm25_vm0, %v730_v7, 0.0 }
 0x170   :  { %v277_v6 = vadd.f32 %v276_v0, %v275_v9 }
 0x171   :  { %v717_v15 = vsel %vm25_vm0, %v715_v14, 0.0  ;;  %v662_v63 = vsel %vm25_vm0, %v660_v11, 0.0 }
 0x172   :  { %v718_v17 = vadd.f32 %v717_v15, %v716_v13  ;;  %v1269_v18 = vpop.xlane.xlu1 %426  ;;  %v1271_v19 = vpop.xlane.xlu0 %416  ;;  %v731_v13 = vsel %vm25_vm0, %v729_v61, 0.0  ;;  %v663_v20 = vadd.f32 %v662_v63, %v661_v58 }
 0x173   :  { %v733_v3 = vadd.f32 %v732_v1, %v731_v13  ;;  %v316_v13 = vmul.f32 2.0, %v1232_v23 }
 0x174   :  { %v719_v21 = vrot.slane %v718_v17, 4 }
 0x176   :  { %v720_v22 = vadd.f32 %v719_v21, %v718_v17  ;;  %v1273_v24 = vpop.xlane.xlu1 %361  ;;  %v287_v25 = vpop.xlane.xlu0 %286 }
 0x177   :  { %v288_v30 = vrot.slane %v287_v25, 4 }
 0x178   :  { %v721_v33 = vrot.slane %v720_v22, 2 }
 0x179   :  { %v289_v34 = vadd.f32 %v288_v30, %v287_v25 }
 0x17a   :  { %v1276_v31 = vpop.xlane.xlu1 %382  ;;  %v722_v36 = vadd.f32 %v721_v33, %v720_v22  ;;  %v734_v22 = vrot.slane %v733_v3, 4 }
 0x17b   :  { %v290_v39 = vrot.slane %v289_v34, 2 }
 0x17c   :  { %v723_v40 = vrot.slane %v722_v36, 1 }
 0x17d   :  { %v291_v42 = vadd.f32 %v290_v39, %v289_v34 }
 0x17e   :  { %v304_v45 = vpop.xlane.xlu1 %303  ;;  %v724_v46 = vadd.f32 %v723_v40, %v722_v36  ;;  %v664_v40 = vrot.slane %v663_v20, 4 }
 0x17f   :  { %v305_v48 = vrot.slane %v304_v45, 4  ;;  %v292_v49 = vrot.slane %v291_v42, 1 }
 0x180   :  { %v1282_v29 = vsub.f32 %v756_v47, %v724_v46  ;;  %v278_v46 = vrot.slane %v277_v6, 2 }
 0x181   :  { %v306_v50 = vadd.f32 %v305_v48, %v304_v45  ;;  %v293_v52 = vadd.f32 %v292_v49, %v291_v42  ;;  %v735_v49 = vadd.f32 %v734_v22, %v733_v3 }
 0x182   :  { %v758_v51 = vsel %vm284_vm1, %v1282_v29, 0.0  ;;  %v279_v2 = vadd.f32 %v278_v46, %v277_v6 }
 0x183   :  { %v307_v54 = vrot.slane %v306_v50, 2  ;;  %759 = vadd.xlane.f32.xlu1 %v758_v51  ;;  %1006 = vpush %v293_v52  ;;  %v736_v5 = vrot.slane %v735_v49, 2 }
 0x185   :  { %v308_v55 = vadd.f32 %v307_v54, %v306_v50 }
 0x187   :  { %v309_v56 = vrot.slane %v308_v55, 1 }
 0x189   :  { %v310_v57 = vadd.f32 %v309_v56, %v308_v55  ;;  %v665_v55 = vadd.f32 %v664_v40, %v663_v20 }
 0x18b   :  { %1008 = vpush %v310_v57  ;;  %v666_v58 = vrot.slane %v665_v55, 2 }
 0x199   :  { %v991_v14 = vpop.f32.mrf.mxu1 }
 0x19a   :  { %v235_v62 = vmul.f32 %v991_v14, %v1166_v28  ;;  %v246_v15 = vmul.f32 %v991_v14, %v991_v14  ;;  %v404_v27 = vsel %vm25_vm0, %v991_v14, 0.0  ;;  %v280_v14 = vrot.slane %v279_v2, 1 }
 0x19b   :  { %v179_v17 = vpop.f32.mrf.mxu1 }
 0x19c   :  { %v234_v21 = vmul.f32 %v179_v17, %v1176_v32  ;;  %v245_v4 = vmul.f32 %v179_v17, %v179_v17  ;;  %v237_v25 = vsel %vm25_vm0, %v235_v62, 0.0  ;;  %v403_v26 = vsel %vm25_vm0, %v179_v17, 0.0 }
 0x19d   :  { %v248_v30 = vsel %vm25_vm0, %v246_v15, 0.0  ;;  %v405_v36 = vadd.f32 %v404_v27, %v403_v26  ;;  %v737_v62 = vadd.f32 %v736_v5, %v735_v49  ;;  %v667_v26 = vadd.f32 %v666_v58, %v665_v55 }
 0x19e   :  { %v236_v33 = vsel %vm25_vm0, %v234_v21, 0.0  ;;  %v247_v28 = vsel %vm25_vm0, %v245_v4, 0.0  ;;  %v1308_v34 = vpop.f32.mrf.mxu1  ;;  %v317_v21 = vmul.f32 %v316_v13, %v1208_v53  ;;  %v363_v13 = vrot.slane %v1273_v24, 4 }
 0x19f   :  { %v238_v37 = vadd.f32 %v237_v25, %v236_v33  ;;  %v249_v39 = vadd.f32 %v248_v30, %v247_v28  ;;  %v693_v32 = vmul.f32 %v1308_v34, %v1188_v38  ;;  %v704_v42 = vmul.f32 %v1308_v34, %v1308_v34  ;;  %406 = vadd.xlane.f32.xlu1 %v405_v36 }
 0x1a0   :  { %v1314_v45 = vpop.f32.mrf.mxu1  ;;  %v772_v25 = vmul.f32 2.0, %v1245_v43  ;;  %v281_v30 = vadd.f32 %v280_v14, %v279_v2  ;;  %v668_v46 = vrot.slane %v667_v26, 1 }
 0x1a1   :  { %v239_v47 = vrot.slane %v238_v37, 4  ;;  %v692_v48 = vmul.f32 %v1314_v45, %v1198_v44  ;;  %v703_v50 = vmul.f32 %v1314_v45, %v1314_v45  ;;  %v250_v51 = vrot.slane %v249_v39, 4 }
 0x1a2   :  { %v695_v38 = vsel %vm25_vm0, %v693_v32, 0.0  ;;  %v706_v56 = vsel %vm25_vm0, %v704_v42, 0.0  ;;  %v773_v42 = vmul.f32 %v772_v25, %v1267_v16 }
 0x1a3   :  { %v240_v52 = vadd.f32 %v239_v47, %v238_v37  ;;  %v694_v54 = vsel %vm25_vm0, %v692_v48, 0.0  ;;  %v705_v59 = vsel %vm25_vm0, %v703_v50, 0.0  ;;  %v251_v60 = vadd.f32 %v250_v51, %v249_v39 }
 0x1a4   :  { %v696_v57 = vadd.f32 %v695_v38, %v694_v54  ;;  %v707_v44 = vadd.f32 %v706_v56, %v705_v59  ;;  %v738_v37 = vrot.slane %v737_v62, 1  ;;  %v669_v38 = vadd.f32 %v668_v46, %v667_v26 }
 0x1a5   :  { %v241_v61 = vrot.slane %v240_v52, 2  ;;  %v252_v9 = vrot.slane %v251_v60, 2  ;;  %v859_v59 = vsel %vm25_vm0, %v1314_v45, 0.0  ;;  %v418_v26 = vrot.slane %v1271_v19, 4 }
 0x1a6   :  { %v697_v7 = vrot.slane %v696_v57, 4  ;;  %v708_v10 = vrot.slane %v707_v44, 4  ;;  %v739_v48 = vadd.f32 %v738_v37, %v737_v62  ;;  %v847_v55 = vmul.f32 %v669_v38, %v669_v38 }
 0x1a7   :  { %v242_v11 = vadd.f32 %v241_v61, %v240_v52  ;;  %v253_v0 = vadd.f32 %v252_v9, %v251_v60  ;;  %v826_v56 = vmul.f32 %v1278_v35, %v669_v38  ;;  %v837_v60 = vsel %vm284_vm1, %v1278_v35, 0.0 }
 0x1a8   :  { %v698_v1 = vadd.f32 %v697_v7, %v696_v57  ;;  %v709_v63 = vadd.f32 %v708_v10, %v707_v44  ;;  %v848_v57 = vmul.f32 %v847_v55, %v669_v38  ;;  %v860_v61 = vsel %vm25_vm0, %v1308_v34, 0.0  ;;  %v348_v10 = vpop.xlane.xlu0 %347 }
 0x1a9   :  { %v243_v3 = vrot.slane %v242_v11, 1  ;;  %v254_v17 = vrot.slane %v253_v0, 1  ;;  %v827_v2 = vsel %vm284_vm1, %v826_v56, 0.0  ;;  %v881_v5 = vsel %vm284_vm1, %v669_v38, 0.0 }
 0x1aa   :  { %v699_v15 = vrot.slane %v698_v1, 2  ;;  %v710_v20 = vrot.slane %v709_v63, 2  ;;  %v849_v44 = vsel %vm284_vm1, %v848_v57, 0.0  ;;  %v871_v7 = vsel %vm284_vm1, %v847_v55, 0.0 }
 0x1ab   :  { %v244_v6 = vadd.f32 %v243_v3, %v242_v11  ;;  %v255_v22 = vadd.f32 %v254_v17, %v253_v0  ;;  %v315_v35 = vmul.f32 0.5, %v1242_v41  ;;  %v771_v34 = vmul.f32 0.5, %v1282_v29 }
 0x1ac   :  { %v700_v4 = vadd.f32 %v699_v15, %v698_v1  ;;  %v711_v27 = vadd.f32 %v710_v20, %v709_v63  ;;  %v373_v11 = vpop.xlane.xlu0 %372  ;;  %v349_v1 = vrot.slane %v348_v10, 4  ;;  %v384_v0 = vrot.slane %v1276_v31, 4 }
 0x1ad   :  { %v318_v33 = vsub.f32 %v244_v6, %v317_v21  ;;  %v335_v28 = vsel %vm284_vm1, %v255_v22, 0.0  ;;  %v374_v58 = vrot.slane %v373_v11, 4  ;;  %v364_v41 = vadd.f32 %v363_v13, %v1273_v24 }
 0x1ae   :  { %v701_v36 = vrot.slane %v700_v4, 1  ;;  %336 = vadd.xlane.f32.xlu1 %v335_v28  ;;  %v712_v39 = vrot.slane %v711_v27, 1  ;;  %v350_v3 = vadd.f32 %v349_v1, %v348_v10  ;;  %v385_v62 = vadd.f32 %v384_v0, %v1276_v31 }
 0x1af   :  { %v319_v32 = vsub.f32 %v318_v33, %v281_v30  ;;  %v375_v15 = vadd.f32 %v374_v58, %v373_v11  ;;  %v365_v17 = vrot.slane %v364_v41, 2  ;;  %v396_v20 = vrot.slane %v1262_v12, 4 }
 0x1b0   :  { %v702_v40 = vadd.f32 %v701_v36, %v700_v4  ;;  %v713_v53 = vadd.f32 %v712_v39, %v711_v27  ;;  %v743_v14 = vpop.xlane.xlu0 %742  ;;  %v428_v6 = vrot.slane %v1269_v18, 4  ;;  %v351_v21 = vrot.slane %v350_v3, 2 }
 0x1b1   :  { %v320_v47 = vadd.f32 %v319_v32, %v1232_v23  ;;  %v386_v4 = vrot.slane %v385_v62, 2  ;;  %v376_v22 = vrot.slane %v375_v15, 2  ;;  %v744_v27 = vrot.slane %v743_v14, 4 }
 0x1b2   :  { %v774_v49 = vsub.f32 %v702_v40, %v773_v42  ;;  %v791_v50 = vsel %vm284_vm1, %v713_v53, 0.0  ;;  %v366_v28 = vadd.f32 %v365_v17, %v364_v41  ;;  %v397_v31 = vadd.f32 %v396_v20, %v1262_v12 }
 0x1b3   :  { %v321_v51 = vsel %vm284_vm1, %v320_v47, 0.0  ;;  %792 = vadd.xlane.f32.xlu1 %v791_v50  ;;  %v334_v9 = vmul.f32 0.5, %v320_v47  ;;  %v429_v36 = vadd.f32 %v428_v6, %v1269_v18  ;;  %v352_v39 = vadd.f32 %v351_v21, %v350_v3 }
 0x1b4   :  { %322 = vadd.xlane.f32.xlu0 %v321_v51  ;;  %v775_v52 = vsub.f32 %v774_v49, %v739_v48  ;;  %v804_v30 = vpop.xlane.xlu0 %803  ;;  %v377_v40 = vadd.f32 %v376_v22, %v375_v15  ;;  %v387_v42 = vadd.f32 %v386_v4, %v385_v62  ;;  %v419_v46 = vadd.f32 %v418_v26, %v1271_v19  ;;  %s1358_s14 = spop %1006 }
 0x1b5   :  { %v745_v53 = vadd.f32 %v744_v27, %v743_v14  ;;  %v805_v50 = vrot.slane %v804_v30, 4  ;;  %v367_v38 = vrot.slane %v366_v28, 1  ;;  %v430_v55 = vrot.slane %v429_v36, 2  ;;  %s443_s6 = smul.f32 4.0, %s1358_s14 }
 0x1b6   :  { %v776_v54 = vadd.f32 %v775_v52, %v1245_v43  ;;  %v353_v12 = vrot.slane %v352_v39, 1  ;;  %v378_v56 = vrot.slane %v377_v40, 1  ;;  %v388_v57 = vrot.slane %v387_v42, 1 }
 0x1b7   :  { %817 = vadd.xlane.f32.xlu1 %v1220_v8  ;;  %v861_v8 = vadd.f32 %v860_v61, %v859_v59  ;;  %v420_v59 = vrot.slane %v419_v46, 2  ;;  %v431_v27 = vadd.f32 %v430_v55, %v429_v36 }
 0x1b8   :  { %v777_v16 = vsel %vm284_vm1, %v776_v54, 0.0  ;;  %v790_v45 = vmul.f32 0.5, %v776_v54  ;;  %v398_v54 = vrot.slane %v397_v31, 2  ;;  %v379_v1 = vadd.f32 %v378_v56, %v377_v40 }
 0x1b9   :  { %778 = vadd.xlane.f32.xlu0 %v777_v16  ;;  %v389_v0 = vadd.f32 %v388_v57, %v387_v42  ;;  %v421_v26 = vadd.f32 %v420_v59, %v419_v46 }
 0x1ba   :  { %v399_v10 = vadd.f32 %v398_v54, %v397_v31 }
 0x1bb   :  { %838 = vadd.xlane.f32.xlu1 %v837_v60  ;;  %v746_v60 = vrot.slane %v745_v53, 2  ;;  %v422_v46 = vrot.slane %v421_v26, 1 }
 0x1bc   :  { %v400_v22 = vrot.slane %v399_v10, 1  ;;  %s1360_s15 = spop %1008 }
 0x1bd   :  { %828 = vadd.xlane.f32.xlu0 %v827_v2  ;;  %v747_v14 = vadd.f32 %v746_v60, %v745_v53 }
 0x1be   :  { %v401_v36 = vadd.f32 %v400_v22, %v399_v10 }
 0x1bf   :  { %862 = vadd.xlane.f32.xlu1 %v861_v8  ;;  %v806_v8 = vadd.f32 %v805_v50, %v804_v30  ;;  %v748_v42 = vrot.slane %v747_v14, 1 }
 0x1c1   :  { %850 = vadd.xlane.f32.xlu0 %v849_v44  ;;  %v807_v62 = vrot.slane %v806_v8, 2 }
 0x1c3   :  { %882 = vadd.xlane.f32.xlu1 %v881_v5  ;;  %v808_v50 = vadd.f32 %v807_v62, %v806_v8 }
 0x1c5   :  { %872 = vadd.xlane.f32.xlu0 %v871_v7 }
 0x1d4   :  { %461 = vrot.lane.b32.xlu1 %v315_v35, %s1107_s0  ;;  %v368_v35 = vadd.f32 %v367_v38, %v366_v28 }
 0x1d8   :  { %921 = vrot.lane.b32.xlu1 %v790_v45, %s1108_s13 }
 0x1db   :  { %917 = vrot.lane.b32.xlu0 %v771_v34, %s1107_s0 }
 0x1dc   :  { %465 = vrot.lane.b32.xlu1 %v334_v9, %s1108_s13  ;;  %v354_v9 = vadd.f32 %v353_v12, %v352_v39 }
 0x20c   :  { %v760_v63 = vpop.xlane.xlu1 %759 }
 0x20d   :  { %v761_v32 = vrot.slane %v760_v63, 4 }
 0x20f   :  { %v762_v16 = vadd.f32 %v761_v32, %v760_v63 }
 0x211   :  { %v763_v11 = vrot.slane %v762_v16, 2 }
 0x213   :  { %v764_v30 = vadd.f32 %v763_v11, %v762_v16 }
 0x215   :  { %v765_v55 = vrot.slane %v764_v30, 1 }
 0x228   :  { %v407_v29 = vpop.xlane.xlu1 %406 }
 0x229   :  { %v408_v33 = vrot.slane %v407_v29, 4 }
 0x22b   :  { %v409_v51 = vadd.f32 %v408_v33, %v407_v29 }
 0x22d   :  { %v410_v44 = vrot.slane %v409_v51, 2 }
 0x22f   :  { %v411_v20 = vadd.f32 %v410_v44, %v409_v51  ;;  %v423_v44 = vadd.f32 %v422_v46, %v421_v26 }
 0x231   :  { %v412_v40 = vrot.slane %v411_v20, 1 }
 0x237   :  { %v337_v25 = vpop.xlane.xlu1 %336 }
 0x238   :  { %v338_v24 = vrot.slane %v337_v25, 4 }
 0x23a   :  { %v339_v37 = vadd.f32 %v338_v24, %v337_v25 }
 0x23c   :  { %v340_v47 = vrot.slane %v339_v37, 2  ;;  %v793_v48 = vpop.xlane.xlu1 %792 }
 0x23d   :  { %v323_v49 = vpop.xlane.xlu0 %322  ;;  %v794_v2 = vrot.slane %v793_v48, 4 }
 0x23e   :  { %v324_v52 = vrot.slane %v323_v49, 4  ;;  %v341_v19 = vadd.f32 %v340_v47, %v339_v37 }
 0x23f   :  { %v795_v58 = vadd.f32 %v794_v2, %v793_v48 }
 0x240   :  { %v325_v18 = vadd.f32 %v324_v52, %v323_v49  ;;  %v818_v61 = vpop.xlane.xlu1 %817  ;;  %v342_v3 = vrot.slane %v341_v19, 1  ;;  %v432_v52 = vrot.slane %v431_v27, 1 }
 0x241   :  { %v819_v45 = vrot.slane %v818_v61, 4  ;;  %v796_v24 = vrot.slane %v795_v58, 2 }
 0x242   :  { %v326_v5 = vrot.slane %v325_v18, 2  ;;  %v779_v7 = vpop.xlane.xlu0 %778  ;;  %v343_v37 = vadd.f32 %v342_v3, %v341_v19 }
 0x243   :  { %v780_v34 = vrot.slane %v779_v7, 4  ;;  %v820_v6 = vadd.f32 %v819_v45, %v818_v61  ;;  %v797_v16 = vadd.f32 %v796_v24, %v795_v58 }
 0x244   :  { %v327_v13 = vadd.f32 %v326_v5, %v325_v18  ;;  %v839_v41 = vpop.xlane.xlu1 %838  ;;  %v413_v18 = vadd.f32 %v412_v40, %v411_v20  ;;  %v433_v5 = vadd.f32 %v432_v52, %v431_v27 }
 0x245   :  { %v781_v63 = vadd.f32 %v780_v34, %v779_v7  ;;  %v840_v15 = vrot.slane %v839_v41, 4  ;;  %v821_v47 = vrot.slane %v820_v6, 2  ;;  %v749_v7 = vadd.f32 %v748_v42, %v747_v14 }
 0x246   :  { %v829_v29 = vpop.xlane.xlu0 %828  ;;  %v328_v17 = vrot.slane %v327_v13, 1  ;;  %v798_v34 = vrot.slane %v797_v16, 1 }
 0x247   :  { %v782_v21 = vrot.slane %v781_v63, 2  ;;  %v830_v4 = vrot.slane %v829_v29, 4  ;;  %v841_v33 = vadd.f32 %v840_v15, %v839_v41  ;;  %v822_v8 = vadd.f32 %v821_v47, %v820_v6 }
 0x248   :  { %v329_v25 = vadd.f32 %v328_v17, %v327_v13  ;;  %v863_v31 = vpop.xlane.xlu1 %862  ;;  %v799_v14 = vadd.f32 %v798_v34, %v797_v16 }
 0x249   :  { %v831_v28 = vadd.f32 %v830_v4, %v829_v29  ;;  %v864_v39 = vrot.slane %v863_v31, 4  ;;  %v783_v53 = vadd.f32 %v782_v21, %v781_v63  ;;  %v842_v38 = vrot.slane %v841_v33, 2 }
 0x24a   :  { %v851_v32 = vpop.xlane.xlu0 %850  ;;  %1010 = vpush %v329_v25  ;;  %v766_v63 = vadd.f32 %v765_v55, %v764_v30  ;;  %v823_v41 = vrot.slane %v822_v8, 1 }
 0x24b   :  { %v832_v48 = vrot.slane %v831_v28, 2  ;;  %v852_v49 = vrot.slane %v851_v32, 4  ;;  %1012 = vpush %v343_v37  ;;  %v865_v51 = vadd.f32 %v864_v39, %v863_v31  ;;  %v784_v59 = vrot.slane %v783_v53, 1 }
 0x24c   :  { %1014 = vpush %v354_v9  ;;  %v883_v12 = vpop.xlane.xlu1 %882  ;;  %v843_v9 = vadd.f32 %v842_v38, %v841_v33  ;;  %v824_v21 = vadd.f32 %v823_v41, %v822_v8  ;;  %v283_v39 = vmul.f32 0.5, %v1232_v23 }
 0x24d   :  { %v853_v54 = vadd.f32 %v852_v49, %v851_v32  ;;  %1016 = vpush %v368_v35  ;;  %v884_v56 = vrot.slane %v883_v12, 4  ;;  %v833_v60 = vadd.f32 %v832_v48, %v831_v28  ;;  %v866_v2 = vrot.slane %v865_v51, 2 }
 0x24e   :  { %1018 = vpush %v379_v1  ;;  %v873_v57 = vpop.xlane.xlu0 %872  ;;  %v785_v13 = vadd.f32 %v784_v59, %v783_v53  ;;  %v809_v1 = vrot.slane %v808_v50, 1  ;;  %v844_v15 = vrot.slane %v843_v9, 1  ;;  %v740_v32 = vmul.f32 0.5, %v1245_v43 }
 0x24f   :  { %v854_v61 = vrot.slane %v853_v54, 2  ;;  %1020 = vpush %v389_v0  ;;  %v874_v19 = vrot.slane %v873_v57, 4  ;;  %v885_v45 = vadd.f32 %v884_v56, %v883_v12  ;;  %v834_v58 = vrot.slane %v833_v60, 1 }
 0x250   :  { %1022 = vpush %v401_v36  ;;  %v867_v3 = vadd.f32 %v866_v2, %v865_v51  ;;  %v810_v20 = vadd.f32 %v809_v1, %v808_v50  ;;  %v845_v26 = vadd.f32 %v844_v15, %v843_v9  ;;  %v462_v28 = vpop.permute.xlu1 %461 }
 0x251   :  { %1024 = vpush %v413_v18  ;;  %v875_v35 = vadd.f32 %v874_v19, %v873_v57  ;;  %v855_v10 = vadd.f32 %v854_v61, %v853_v54  ;;  %v886_v11 = vrot.slane %v885_v45, 2  ;;  %v835_v6 = vadd.f32 %v834_v58, %v833_v60 }
 0x252   :  { %1026 = vpush %v423_v44  ;;  %v868_v4 = vrot.slane %v867_v3, 1  ;;  %v918_v37 = vpop.permute.xlu0 %917  ;;  %v468_v42 = vsel %vm25_vm0, %v283_v39, %v462_v28 }
 0x253   :  { %1028 = vpush %v433_v5  ;;  %v876_v0 = vrot.slane %v875_v35, 2  ;;  %v856_v62 = vrot.slane %v855_v10, 1  ;;  %v887_v17 = vadd.f32 %v886_v11, %v885_v45  ;;  %v924_v53 = vsel %vm25_vm0, %v740_v32, %v918_v37 }
 0x254   :  { %1030 = vpush %v749_v7  ;;  %v869_v24 = vadd.f32 %v868_v4, %v867_v3  ;;  %v922_v31 = vpop.permute.xlu1 %921 }
 0x255   :  { %1032 = vpush %v766_v63  ;;  %v877_v29 = vadd.f32 %v876_v0, %v875_v35  ;;  %v857_v25 = vadd.f32 %v856_v62, %v855_v10  ;;  %v888_v27 = vrot.slane %v887_v17, 1  ;;  %v925_v48 = vsel %vm469_vm2, %v924_v53, %v922_v31 }
 0x256   :  { %1034 = vpush %v785_v13 }
 0x257   :  { %1036 = vpush %v799_v14  ;;  %v878_v22 = vrot.slane %v877_v29, 1  ;;  %v889_v33 = vadd.f32 %v888_v27, %v887_v17 }
 0x258   :  { %1038 = vpush %v810_v20  ;;  %v466_v40 = vpop.permute.xlu1 %465 }
 0x259   :  { %1040 = vpush %v824_v21  ;;  %v879_v30 = vadd.f32 %v878_v22, %v877_v29  ;;  %v470_v47 = vsel %vm469_vm2, %v468_v42, %v466_v40 }
 0x25a   :  { %1042 = vpush %v835_v6 }
 0x25b   :  { %1044 = vpush %v845_v26 }
 0x25c   :  { %1046 = vpush %v857_v25 }
 0x25d   :  { %1048 = vpush %v869_v24 }
 0x25e   :  { %1050 = vpush %v879_v30 }
 0x25f   :  { %1052 = vpush %v889_v33 }
 0x27b   :  { %s1362_s16 = spop %1010 }
 0x27c   :  { %s1013_s17 = spop %1012 }
 0x27d   :  { %s1015_s18 = spop %1014 }
 0x27e   :  { %s435_s19 = smul.f32 3.0, %s1015_s18  ;;  %s1017_s20 = spop %1016 }
 0x27f   :  { %s437_s21 = smul.f32 9.0, %s1017_s20  ;;  %s1019_s23 = spop %1018 }
 0x280   :  { %s436_s22 = ssub.f32 %s1013_s17, %s435_s19  ;;  %s1021_s25 = spop %1020 }
 0x281   :  { %s439_s26 = smul.f32 6.0, %s1019_s23  ;;  %s1023_s27 = spop %1022 }
 0x282   :  { %s438_s24 = sadd.f32 %s437_s21, %s436_s22  ;;  %s1025_s29 = spop %1024 }
 0x283   :  { %s441_s30 = smul.f32 6.0, %s1021_s25  ;;  %s1364_s2 = spop %1026 }
 0x284   :  { %s440_s28 = ssub.f32 %s438_s24, %s439_s26  ;;  %s1367_s5 = spop %1028 }
 0x285   :  { %s1371_s8 = spop %1030  ;;  %s445_s12 = smul.f32 4.0, %s1023_s27 }
 0x286   :  { %s442_s4 = sadd.f32 %s441_s30, %s440_s28  ;;  %s1374_s11 = spop %1032 }
 0x287   :  { %s1376_s0 = spop %1034  ;;  %s447_s13 = smul.f32 3.0, %s1025_s29 }
 0x288   :  { %s444_s10 = ssub.f32 %s442_s4, %s443_s6  ;;  %s449_s17 = smul.f32 12.0, %s1364_s2 }
 0x289   :  { %s1037_s18 = spop %1036  ;;  %s451_s30 = smul.f32 5.0, %s1367_s5 }
 0x28a   :  { %s446_s19 = sadd.f32 %s445_s12, %s444_s10  ;;  %s1039_s20 = spop %1038 }
 0x28b   :  { %s891_s21 = smul.f32 3.0, %s1039_s20  ;;  %s1041_s22 = spop %1040 }
 0x28c   :  { %s893_s23 = smul.f32 9.0, %s1041_s22  ;;  %s1043_s24 = spop %1042 }
 0x28d   :  { %s892_s25 = ssub.f32 %s1037_s18, %s891_s21  ;;  %s895_s26 = smul.f32 6.0, %s1043_s24 }
 0x28e   :  { %s448_s28 = sadd.f32 %s447_s13, %s446_s19  ;;  %s1045_s27 = spop %1044 }
 0x28f   :  { %s894_s4 = sadd.f32 %s893_s23, %s892_s25  ;;  %s753_s6 = smul.f32 0.16666667, %s1371_s8 }
 0x290   :  { %s897_s2 = smul.f32 6.0, %s1045_s27  ;;  %s450_s7 = ssub.f32 %s448_s28, %s449_s17 }
 0x291   :  { %s896_s29 = ssub.f32 %s894_s4, %s895_s26  ;;  %s1047_s10 = spop %1046  ;;  %v912_v23 = vstv %s753_s6 }
 0x292   :  { %s899_s12 = smul.f32 4.0, %s1371_s8  ;;  %s1049_s3 = spop %1048  ;;  %v926_v50 = vsel %vm471_vm3, %v925_v48, %v912_v23 }
 0x293   :  { %s898_s20 = sadd.f32 %s897_s2, %s896_s29  ;;  %s770_s9 = smul.f32 0.125, %s1374_s11 }
 0x294   :  { %s901_s1 = smul.f32 4.0, %s1047_s10  ;;  %s1383_s18 = sadd.f32 %s451_s30, %s450_s7 }
 0x295   :  { %s900_s22 = ssub.f32 %s898_s20, %s899_s12  ;;  %s1051_s13 = spop %1050  ;;  %v913_v51 = vstv %s770_s9 }
 0x296   :  { %s903_s17 = smul.f32 3.0, %s1049_s3  ;;  %s1053_s21 = spop %1052  ;;  %v927_v55 = vsel %vm473_vm4, %v926_v50, %v913_v51 }
 0x297   :  { %s902_s5 = sadd.f32 %s901_s1, %s900_s22  ;;  %s789_s19 = smul.f32 0.1, %s1376_s0 }
 0x298   :  { %s905_s11 = smul.f32 12.0, %s1051_s13 }
 0x299   :  { %s904_s7 = sadd.f32 %s903_s17, %s902_s5  ;;  %s455_s23 = smul.f32 0.083333336, %s1383_s18  ;;  %v914_v46 = vstv %s789_s19 }
 0x29a   :  { %s907_s25 = smul.f32 5.0, %s1053_s21  ;;  %v928_v16 = vsel %vm475_vm5, %v927_v55, %v914_v46 }
 0x29b   :  { %s906_s24 = ssub.f32 %s904_s7, %s905_s11  ;;  %s1405_s1 = smul.f32 0.16666667, %s1358_s14  ;;  %v459_v38 = vstv %s455_s23 }
 0x29c   :  { %s1406_s0 = smul.f32 0.1, %s1362_s16  ;;  %s1109_s14 = smov [#allocation5]  }
 0x29d   :  { %v456_v43 = vstv %s1405_s1  ;;  %s908_s3 = sadd.f32 %s907_s25, %s906_s24  ;;  %s1407_s26 = smul.f32 0.125, %s1360_s15 }
 0x29e   :  { %v472_v49 = vsel %vm471_vm3, %v470_v47, %v456_v43  ;;  %v458_v36 = vstv %s1406_s0  ;;  %s943_s9 = sshll.u32 %s1109_s14, 4  ;;  %s944_s9 = int_to_ptr.vmem [resolvable:$true] %s943_s9 }
 0x29f   :  { %v457_v52 = vstv %s1407_s26  ;;  %s911_s8 = smul.f32 0.083333336, %s908_s3  ;;  %s1080_s15 = scalar_lea.vmem %s944_s9, 32 }
 0x2a0   :  { %v474_v54 = vsel %vm473_vm4, %v472_v49, %v457_v52  ;;  %p1081_p5 = scmp.ne.s32.totalorder %s944_s9, %s1080_s15  ;;  %p1085_p6 = scmp.lt.s32.totalorder %s944_s9, %s944_s9 }
 0x2a1   :  { %v476_v12 = vsel %vm475_vm5, %v474_v54, %v458_v36  ;;  %v915_v18 = vstv %s911_s8  ;;  %p1086_p7 = scmp.lt.s32.totalorder %s1080_s15, %s1080_s15 }
 0x2a2   :  { %v478_v56 = vsel %vm477_vm6, %v476_v12, %v459_v38  ;;  %v929_v57 = vsel %vm477_vm6, %v928_v16, %v915_v18 }
 0x2a3   :  { %v930_v59 = vsel %vm479_vm7, %v929_v57, 0.0  ;;  %v480_v2 = vsel %vm479_vm7, %v478_v56, 0.0  ;;  %p1087_p8 = por %p1086_p7, %p1085_p6 }
 0x2a4   :  { %v932_v60 = vrot.slane %v930_v59, 7 }
 0x2a5   :  { %p1088_p9 = pnand %p1087_p8, %p1081_p5 }
 0x2a6   :  { %v935_v61 = vsel %vm934_vm8, %v480_v2, %v932_v60 }
 0x2a7   :  { %936 = vst [vmem:[#allocation5] sm:$0x3] %v935_v61 }
 0x2a8   :  { %1091 = shalt.err (!%p1088_p9)
}
 0x2a9   :  { %s1408_s27 = sld [smem:[#allocation8_spill]] }
 0x2af   :  { %946 = dma.vmem_to_hbm [thread:$0]  %s944_s9, 32, %s1408_s27, [#allocation4]  }
 0x2b0   :  { %1102 = dma.done.wait [#allocation4], 32  }
 0x2b1   :  { %1103 = vsyncadd [#allocation4], 4294967264 }
 0x2b2   :  { %950 = vsyncpa [#allocation3], 1 }
 0x2b3   :  { %951 = vsyncpa [#allocation4], 1 }

</bundles_post_ra>
